<compile_context>
chip_gen: v7x
topology: tpu7x:2x2x1
jax: 0.10.0
libtpu: 0.0.40
codegen_flags: <defaults>
</compile_context>

<pallas_src>
import jax
import jax.numpy as jnp
import numpy as np
from jax.experimental import pallas as pl
from jax.experimental.pallas import tpu as pltpu


def _round_up(a, m):
    return ((a + m - 1) // m) * m


# ----------------------------- Pallas kernel ---------------------------------
def cvae_kernel(
    xc_ref, eps_ref,
    w1_ref, b1_ref,               # fused encoder_fc1: [W_x ; W_c ; 0]  (128, 512)
    w2_ref, b2_ref,               # encoder_fc2                        (512, 256)
    wmlv_ref, bmlv_ref,           # fused [W_mu | W_logvar]            (256, 2*latent)
    wd1z_ref, wd1c_ref, bd1_ref,  # decoder_fc1: z-part (latent, 256) + c-part
                                  #   embedded in a (128, 256) [0 ; W_c ; 0] weight
    wd2_ref, bd2_ref,             # decoder_fc2                        (256, 512)
    wout_ref, bout_ref,           # decoder_output, padded to 128-lane multiple
    recon_ref, mlv_ref,           # outputs: padded recon, packed [mu | logvar]
):
    f32, bf16 = jnp.float32, jnp.bfloat16
    xc = xc_ref[...]                         # (TB, 128) bf16: [x | c | 0]
    latent = eps_ref.shape[1]

    # ---- encoder (all matmuls bf16 x bf16, f32 accumulate on the MXU) ----
    h1 = jnp.dot(xc, w1_ref[...], preferred_element_type=f32) + b1_ref[...]
    h1 = jnp.maximum(h1, 0.0)                # ReLU (dropout1 = identity, eval)

    h2 = jnp.dot(h1.astype(bf16), w2_ref[...], preferred_element_type=f32) + b2_ref[...]
    h2 = jnp.maximum(h2, 0.0)                # ReLU (dropout2 = identity, eval)

    # fused mu/logvar head: single 128-lane matmul + lane-dense store
    mlv = jnp.dot(h2.astype(bf16), wmlv_ref[...], preferred_element_type=f32) + bmlv_ref[...]
    mlv_ref[...] = mlv

    mu = mlv[:, :latent]
    logvar = mlv[:, latent:]

    # ---- reparameterize ----
    z = mu + eps_ref[...] * jnp.exp(0.5 * logvar)

    # ---- decoder ----
    # Class contribution reuses the lane-dense xc tile against a (128, 256)
    # weight with W_c embedded at rows [input_dim : input_dim + n_classes]:
    # one extra single-K-pass MXU matmul, no VPU broadcast loops.
    d1 = (jnp.dot(z.astype(bf16), wd1z_ref[...], preferred_element_type=f32)
          + jnp.dot(xc, wd1c_ref[...], preferred_element_type=f32)
          + bd1_ref[...])
    d1 = jnp.maximum(d1, 0.0)                # ReLU (dropout1 = identity, eval)

    d2 = jnp.dot(d1.astype(bf16), wd2_ref[...], preferred_element_type=f32) + bd2_ref[...]
    d2 = jnp.maximum(d2, 0.0)                # ReLU (dropout2 = identity, eval)

    recon_ref[...] = (jnp.dot(d2.astype(bf16), wout_ref[...], preferred_element_type=f32)
                      + bout_ref[...])


# --------------------------- param preprocessing ------------------------------
def prepare_params(params, input_dim, latent_dim, n_classes):
    """Build the fused / padded bf16 weights the kernel consumes:
      - encoder_fc1 weight zero-embedded into a (128, 512) [W_x ; W_c ; 0] matrix,
      - decoder_fc1 class part zero-embedded into a (128, 256) matrix aligned
        with the [x | c | 0] input layout,
      - fused [W_mu | W_logvar] head,
      - decoder_output padded to a multiple of 128 output lanes.
    Matrices are bf16 (MXU-native, halved HBM bytes); biases stay f32."""
    bf16, f32 = jnp.bfloat16, jnp.float32
    xc_pad = _round_up(input_dim + n_classes, 128)
    d_out_pad = _round_up(input_dim, 128)
    we1, wd1 = params["we1"], params["wd1"]

    w1 = jnp.zeros((xc_pad, 512), f32).at[:input_dim + n_classes].set(we1)
    wd1c = (jnp.zeros((xc_pad, 256), f32)
            .at[input_dim:input_dim + n_classes].set(wd1[latent_dim:]))

    return dict(
        w1=w1.astype(bf16),
        b1=params["be1"].astype(f32),
        w2=params["we2"].astype(bf16),
        b2=params["be2"].astype(f32),
        wmlv=jnp.concatenate([params["wmu"], params["wlv"]], axis=1).astype(bf16),
        bmlv=jnp.concatenate([params["bmu"], params["blv"]], axis=1).astype(f32),
        wd1z=wd1[:latent_dim].astype(bf16),
        wd1c=wd1c.astype(bf16),
        bd1=params["bd1"].astype(f32),
        wd2=params["wd2"].astype(bf16),
        bd2=params["bd2"].astype(f32),
        wout=jnp.pad(params["wout"], ((0, 0), (0, d_out_pad - input_dim))).astype(bf16),
        bout=jnp.pad(params["bout"], ((0, 0), (0, d_out_pad - input_dim))).astype(f32),
    )


def _choose_batch_tile(B, max_tile):
    """Sublane-aligned batch tile: give >=2 grid steps whenever the batch
    allows (so ("parallel",) can shard across v7x's 2 TensorCores) and keep
    padded-row waste small (avoids ~50% wasted MXU work for awkward B)."""
    B8 = _round_up(B, 8)
    cap = min(max_tile, B8)
    if B8 >= 16:
        cap = min(cap, _round_up((B8 + 1) // 2, 8))
    cap = max(cap, 8)
    best_tb, best_waste = cap, None
    tb = cap
    while tb >= 8:
        waste = _round_up(B8, tb) - B8
        if best_waste is None or waste < best_waste:
            best_tb, best_waste = tb, waste
        if 16 * waste <= B8:          # <= ~6% padded rows: good enough
            return tb
        tb -= 8
    return best_tb


def _pack_xc(x, c, xc_pad):
    """Lane-dense [x | c | 0] (B, xc_pad) bf16 input."""
    B, input_dim = x.shape
    n_classes = c.shape[1]
    xc = jnp.zeros((B, xc_pad), jnp.float32)
    xc = xc.at[:, :input_dim].set(x).at[:, input_dim:input_dim + n_classes].set(c)
    return xc.astype(jnp.bfloat16)


# ------------------------------- wrapper --------------------------------------
def cvae_forward(x, c, eps, params, *, batch_tile=512):
    """Fused CVAE forward.  x:(B,input_dim), c:(B,n_classes) one-hot,
    eps:(B,latent_dim).  Returns (recon_x, mu, logvar) in f32."""
    B, input_dim = x.shape
    n_classes = c.shape[1]
    latent_dim = eps.shape[1]

    kp = prepare_params(params, input_dim, latent_dim, n_classes)
    xc_pad = _round_up(input_dim + n_classes, 128)
    d_out_pad = _round_up(input_dim, 128)

    xc = _pack_xc(x, c, xc_pad)

    TB = _choose_batch_tile(B, batch_tile)
    B_pad = _round_up(B, TB)

    def pad_rows(a):
        return a if a.shape[0] == B_pad else jnp.pad(a, ((0, B_pad - a.shape[0]), (0, 0)))

    xc_p, eps_p = pad_rows(xc), pad_rows(eps)

    weight_order = ["w1", "b1", "w2", "b2", "wmlv", "bmlv",
                    "wd1z", "wd1c", "bd1", "wd2", "bd2", "wout", "bout"]
    weight_args = [kp[k] for k in weight_order]
    inputs = [xc_p, eps_p] + weight_args

    def batch_spec(ncols):
        return pl.BlockSpec((TB, ncols), lambda i: (i, 0))

    def resident_spec(arr):
        # constant block index -> fetched once, stays VMEM-resident across grid
        return pl.BlockSpec(arr.shape, lambda i: (0, 0))

    in_specs = ([batch_spec(xc_pad), batch_spec(latent_dim)]
                + [resident_spec(w) for w in weight_args])

    out_shape = (
        jax.ShapeDtypeStruct((B_pad, d_out_pad), jnp.float32),       # recon (padded)
        jax.ShapeDtypeStruct((B_pad, 2 * latent_dim), jnp.float32),  # packed mu|logvar
    )
    out_specs = (batch_spec(d_out_pad), batch_spec(2 * latent_dim))

    flops = 2 * B_pad * (xc_pad * 512 + 512 * 256 + 256 * (2 * latent_dim)
                         + latent_dim * 256 + xc_pad * 256 + 256 * 512
                         + 512 * d_out_pad)
    bytes_accessed = sum(int(np.prod(a.shape)) * a.dtype.itemsize for a in inputs)
    bytes_accessed += B_pad * (d_out_pad + 2 * latent_dim) * 4
    cost = pl.CostEstimate(flops=flops,
                           transcendentals=B_pad * latent_dim,
                           bytes_accessed=bytes_accessed)

    recon_pad, mlv = pl.pallas_call(
        cvae_kernel,
        grid=(B_pad // TB,),
        in_specs=in_specs,
        out_specs=out_specs,
        out_shape=out_shape,
        compiler_params=pltpu.CompilerParams(
            dimension_semantics=("parallel",),   # batch axis -> 2 TCs on v7x
            vmem_limit_bytes=32 << 20,           # well under v7x's 64 MiB VMEM
        ),
        cost_estimate=cost,
    )(*inputs)

    recon = recon_pad[:B, :input_dim]
    mu = mlv[:B, :latent_dim]
    logvar = mlv[:B, latent_dim:]
    return recon, mu, logvar


# -------------------------- deterministic params -------------------------------
def init_linear(key, fan_in, fan_out):
    """PyTorch nn.Linear default init: U(-1/sqrt(fan_in), 1/sqrt(fan_in))."""
    kw, kb = jax.random.split(key)
    bound = 1.0 / np.sqrt(fan_in)
    w = jax.random.uniform(kw, (fan_in, fan_out), jnp.float32, -bound, bound)
    b = jax.random.uniform(kb, (1, fan_out), jnp.float32, -bound, bound)
    return w, b


def make_params(input_dim, latent_dim, n_classes, seed=0):
    keys = jax.random.split(jax.random.PRNGKey(seed), 7)
    p = {}
    p["we1"], p["be1"] = init_linear(keys[0], input_dim + n_classes, 512)
    p["we2"], p["be2"] = init_linear(keys[1], 512, 256)
    p["wmu"], p["bmu"] = init_linear(keys[2], 256, latent_dim)
    p["wlv"], p["blv"] = init_linear(keys[3], 256, latent_dim)
    p["wd1"], p["bd1"] = init_linear(keys[4], latent_dim + n_classes, 256)
    p["wd2"], p["bd2"] = init_linear(keys[5], 256, 512)
    p["wout"], p["bout"] = init_linear(keys[6], 512, input_dim)
    return p


# ---------------------------- pure-JAX reference --------------------------------
def cvae_ref(xc_bf16, eps, kp, input_dim, latent_dim):
    """Reference using the same bf16 weights / bf16 activation casts the kernel uses
    (bf16 x bf16 matmuls with f32 accumulation)."""
    f32, bf16 = jnp.float32, jnp.bfloat16
    mm = lambda a, w: jnp.dot(a.astype(bf16), w, preferred_element_type=f32)
    h1 = jax.nn.relu(mm(xc_bf16, kp["w1"]) + kp["b1"])
    h2 = jax.nn.relu(mm(h1, kp["w2"]) + kp["b2"])
    mlv = mm(h2, kp["wmlv"]) + kp["bmlv"]
    mu, logvar = mlv[:, :latent_dim], mlv[:, latent_dim:]
    z = mu + eps * jnp.exp(0.5 * logvar)
    d1 = jax.nn.relu(mm(z, kp["wd1z"]) + mm(xc_bf16, kp["wd1c"]) + kp["bd1"])
    d2 = jax.nn.relu(mm(d1, kp["wd2"]) + kp["bd2"])
    recon = (mm(d2, kp["wout"]) + kp["bout"])[:, :input_dim]
    return recon, mu, logvar


if __name__ == "__main__":
    # small, forward-consistent shapes: n_channels=4, n_times=16 -> input_dim=64
    B = 2
    n_channels, n_times = 4, 16
    input_dim = n_channels * n_times      # 64
    latent_dim = 64
    n_classes = 4

    root = jax.random.PRNGKey(0)
    kx, kc, keps = jax.random.split(root, 3)

    x = jax.random.normal(kx, (B, input_dim), jnp.float32)
    labels = jax.random.randint(kc, (B,), 0, n_classes)
    c = jax.nn.one_hot(labels, n_classes, dtype=jnp.float32)
    eps = jax.random.normal(keps, (B, latent_dim), jnp.float32)
    # TODO(synk): eps could be drawn in-kernel via pltpu.prng_seed/stateful_normal;
    # kept external here so the run is deterministic and verifiable vs the reference.

    params = make_params(input_dim, latent_dim, n_classes, seed=0)

    recon, mu, logvar = cvae_forward(x, c, eps, params)
    jax.block_until_ready((recon, mu, logvar))

    # sanity check against pure-JAX reference built from the same kernel weights
    kp = prepare_params(params, input_dim, latent_dim, n_classes)
    xc_ref_in = _pack_xc(x, c, _round_up(input_dim + n_classes, 128))
    r_ref, mu_ref, lv_ref = cvae_ref(xc_ref_in, eps, kp, input_dim, latent_dim)
    np.testing.assert_allclose(np.asarray(recon), np.asarray(r_ref), rtol=2e-3, atol=2e-3)
    np.testing.assert_allclose(np.asarray(mu), np.asarray(mu_ref), rtol=2e-3, atol=2e-3)
    np.testing.assert_allclose(np.asarray(logvar), np.asarray(lv_ref), rtol=2e-3, atol=2e-3)

    print("KERNEL_OK")
</pallas_src>

<mosaic_0001>
module attributes {stable_mosaic.version = 11 : i64} {
  func.func @cvae_kernel(%arg0: i32, %arg1: memref<8x128xbf16, #tpu.memory_space<vmem>>, %arg2: memref<8x64xf32, #tpu.memory_space<vmem>>, %arg3: memref<128x512xbf16, #tpu.memory_space<vmem>>, %arg4: memref<1x512xf32, #tpu.memory_space<vmem>>, %arg5: memref<512x256xbf16, #tpu.memory_space<vmem>>, %arg6: memref<1x256xf32, #tpu.memory_space<vmem>>, %arg7: memref<256x128xbf16, #tpu.memory_space<vmem>>, %arg8: memref<1x128xf32, #tpu.memory_space<vmem>>, %arg9: memref<64x256xbf16, #tpu.memory_space<vmem>>, %arg10: memref<128x256xbf16, #tpu.memory_space<vmem>>, %arg11: memref<1x256xf32, #tpu.memory_space<vmem>>, %arg12: memref<256x512xbf16, #tpu.memory_space<vmem>>, %arg13: memref<1x512xf32, #tpu.memory_space<vmem>>, %arg14: memref<512x128xbf16, #tpu.memory_space<vmem>>, %arg15: memref<1x128xf32, #tpu.memory_space<vmem>>, %arg16: memref<8x128xf32, #tpu.memory_space<vmem>>, %arg17: memref<8x128xf32, #tpu.memory_space<vmem>>) attributes {dimension_semantics = [#tpu.dimension_semantics<parallel>], iteration_bounds = array<i64: 1>, scalar_prefetch = 0 : i64, scratch_operands = 0 : i64, tpu.core_type = #tpu.core_type<tc>, window_params = [{transform_indices = @transform_0, window_bounds = array<i64: 8, 128>}, {transform_indices = @transform_1, window_bounds = array<i64: 8, 64>}, {pipeline_mode = #tpu.pipeline_mode<synchronous>, transform_indices = @transform_2, window_bounds = array<i64: 128, 512>}, {pipeline_mode = #tpu.pipeline_mode<synchronous>, transform_indices = @transform_3, window_bounds = array<i64: 1, 512>}, {pipeline_mode = #tpu.pipeline_mode<synchronous>, transform_indices = @transform_4, window_bounds = array<i64: 512, 256>}, {pipeline_mode = #tpu.pipeline_mode<synchronous>, transform_indices = @transform_5, window_bounds = array<i64: 1, 256>}, {pipeline_mode = #tpu.pipeline_mode<synchronous>, transform_indices = @transform_6, window_bounds = array<i64: 256, 128>}, {pipeline_mode = #tpu.pipeline_mode<synchronous>, transform_indices = @transform_7, window_bounds = array<i64: 1, 128>}, {pipeline_mode = #tpu.pipeline_mode<synchronous>, transform_indices = @transform_8, window_bounds = array<i64: 64, 256>}, {pipeline_mode = #tpu.pipeline_mode<synchronous>, transform_indices = @transform_9, window_bounds = array<i64: 128, 256>}, {pipeline_mode = #tpu.pipeline_mode<synchronous>, transform_indices = @transform_10, window_bounds = array<i64: 1, 256>}, {pipeline_mode = #tpu.pipeline_mode<synchronous>, transform_indices = @transform_11, window_bounds = array<i64: 256, 512>}, {pipeline_mode = #tpu.pipeline_mode<synchronous>, transform_indices = @transform_12, window_bounds = array<i64: 1, 512>}, {pipeline_mode = #tpu.pipeline_mode<synchronous>, transform_indices = @transform_13, window_bounds = array<i64: 512, 128>}, {pipeline_mode = #tpu.pipeline_mode<synchronous>, transform_indices = @transform_14, window_bounds = array<i64: 1, 128>}, {transform_indices = @transform_15, window_bounds = array<i64: 8, 128>}, {transform_indices = @transform_16, window_bounds = array<i64: 8, 128>}]} {
    %c0 = arith.constant 0 : index
    %c0_0 = arith.constant 0 : index
    %0 = vector.load %arg1[%c0, %c0_0] : memref<8x128xbf16, #tpu.memory_space<vmem>>, vector<8x128xbf16>
    %c0_1 = arith.constant 0 : index
    %c0_2 = arith.constant 0 : index
    %1 = vector.load %arg3[%c0_1, %c0_2] : memref<128x512xbf16, #tpu.memory_space<vmem>>, vector<128x512xbf16>
    %cst = arith.constant dense<0.000000e+00> : vector<8x512xf32>
    %2 = tpu.matmul %0, %1, %cst {dimension_numbers = #tpu.dot_dimension_numbers<[1], [0], [0], [1], [0, 0, 1, 1], [], []>} : vector<8x128xbf16>, vector<128x512xbf16>, vector<8x512xf32> -> vector<8x512xf32>
    %c0_3 = arith.constant 0 : index
    %c0_4 = arith.constant 0 : index
    %3 = vector.load %arg4[%c0_3, %c0_4] : memref<1x512xf32, #tpu.memory_space<vmem>>, vector<1x512xf32>
    %4 = vector.broadcast %3 : vector<1x512xf32> to vector<8x512xf32>
    %5 = arith.addf %2, %4 : vector<8x512xf32>
    %cst_5 = arith.constant 0.000000e+00 : f32
    %6 = vector.broadcast %cst_5 : f32 to vector<8x512xf32>
    %7 = arith.maximumf %5, %6 : vector<8x512xf32>
    %8 = arith.truncf %7 : vector<8x512xf32> to vector<8x512xbf16>
    %c0_6 = arith.constant 0 : index
    %c0_7 = arith.constant 0 : index
    %9 = vector.load %arg5[%c0_6, %c0_7] : memref<512x256xbf16, #tpu.memory_space<vmem>>, vector<512x256xbf16>
    %cst_8 = arith.constant dense<0.000000e+00> : vector<8x256xf32>
    %10 = tpu.matmul %8, %9, %cst_8 {dimension_numbers = #tpu.dot_dimension_numbers<[1], [0], [0], [1], [0, 0, 1, 1], [], []>} : vector<8x512xbf16>, vector<512x256xbf16>, vector<8x256xf32> -> vector<8x256xf32>
    %c0_9 = arith.constant 0 : index
    %c0_10 = arith.constant 0 : index
    %11 = vector.load %arg6[%c0_9, %c0_10] : memref<1x256xf32, #tpu.memory_space<vmem>>, vector<1x256xf32>
    %12 = vector.broadcast %11 : vector<1x256xf32> to vector<8x256xf32>
    %13 = arith.addf %10, %12 : vector<8x256xf32>
    %cst_11 = arith.constant 0.000000e+00 : f32
    %14 = vector.broadcast %cst_11 : f32 to vector<8x256xf32>
    %15 = arith.maximumf %13, %14 : vector<8x256xf32>
    %16 = arith.truncf %15 : vector<8x256xf32> to vector<8x256xbf16>
    %c0_12 = arith.constant 0 : index
    %c0_13 = arith.constant 0 : index
    %17 = vector.load %arg7[%c0_12, %c0_13] : memref<256x128xbf16, #tpu.memory_space<vmem>>, vector<256x128xbf16>
    %cst_14 = arith.constant dense<0.000000e+00> : vector<8x128xf32>
    %18 = tpu.matmul %16, %17, %cst_14 {dimension_numbers = #tpu.dot_dimension_numbers<[1], [0], [0], [1], [0, 0, 1, 1], [], []>} : vector<8x256xbf16>, vector<256x128xbf16>, vector<8x128xf32> -> vector<8x128xf32>
    %c0_15 = arith.constant 0 : index
    %c0_16 = arith.constant 0 : index
    %19 = vector.load %arg8[%c0_15, %c0_16] : memref<1x128xf32, #tpu.memory_space<vmem>>, vector<1x128xf32>
    %20 = vector.broadcast %19 : vector<1x128xf32> to vector<8x128xf32>
    %21 = arith.addf %18, %20 : vector<8x128xf32>
    %c0_17 = arith.constant 0 : index
    %c0_18 = arith.constant 0 : index
    %22 = vector.load %arg17[%c0_17, %c0_18] : memref<8x128xf32, #tpu.memory_space<vmem>>, vector<8x128xf32>
    tpu.vector_store %arg17[%c0_17, %c0_18], %21 {strides = array<i32>} : memref<8x128xf32, #tpu.memory_space<vmem>>, vector<8x128xf32>,
    %23 = vector.extract_strided_slice %21 {offsets = [0, 0], sizes = [8, 64], strides = [1, 1]} : vector<8x128xf32> to vector<8x64xf32>
    %24 = vector.extract_strided_slice %21 {offsets = [0, 64], sizes = [8, 64], strides = [1, 1]} : vector<8x128xf32> to vector<8x64xf32>
    %c0_19 = arith.constant 0 : index
    %c0_20 = arith.constant 0 : index
    %25 = vector.load %arg2[%c0_19, %c0_20] : memref<8x64xf32, #tpu.memory_space<vmem>>, vector<8x64xf32>
    %cst_21 = arith.constant 5.000000e-01 : f32
    %26 = vector.broadcast %cst_21 : f32 to vector<8x64xf32>
    %27 = arith.mulf %26, %24 : vector<8x64xf32>
    %28 = math.exp %27 : vector<8x64xf32>
    %29 = arith.mulf %25, %28 : vector<8x64xf32>
    %30 = arith.addf %23, %29 : vector<8x64xf32>
    %31 = arith.truncf %30 : vector<8x64xf32> to vector<8x64xbf16>
    %c0_22 = arith.constant 0 : index
    %c0_23 = arith.constant 0 : index
    %32 = vector.load %arg9[%c0_22, %c0_23] : memref<64x256xbf16, #tpu.memory_space<vmem>>, vector<64x256xbf16>
    %cst_24 = arith.constant dense<0.000000e+00> : vector<8x256xf32>
    %33 = tpu.matmul %31, %32, %cst_24 {dimension_numbers = #tpu.dot_dimension_numbers<[1], [0], [0], [1], [0, 0, 1, 1], [], []>} : vector<8x64xbf16>, vector<64x256xbf16>, vector<8x256xf32> -> vector<8x256xf32>
    %c0_25 = arith.constant 0 : index
    %c0_26 = arith.constant 0 : index
    %34 = vector.load %arg10[%c0_25, %c0_26] : memref<128x256xbf16, #tpu.memory_space<vmem>>, vector<128x256xbf16>
    %cst_27 = arith.constant dense<0.000000e+00> : vector<8x256xf32>
    %35 = tpu.matmul %0, %34, %cst_27 {dimension_numbers = #tpu.dot_dimension_numbers<[1], [0], [0], [1], [0, 0, 1, 1], [], []>} : vector<8x128xbf16>, vector<128x256xbf16>, vector<8x256xf32> -> vector<8x256xf32>
    %36 = arith.addf %33, %35 : vector<8x256xf32>
    %c0_28 = arith.constant 0 : index
    %c0_29 = arith.constant 0 : index
    %37 = vector.load %arg11[%c0_28, %c0_29] : memref<1x256xf32, #tpu.memory_space<vmem>>, vector<1x256xf32>
    %38 = vector.broadcast %37 : vector<1x256xf32> to vector<8x256xf32>
    %39 = arith.addf %36, %38 : vector<8x256xf32>
    %cst_30 = arith.constant 0.000000e+00 : f32
    %40 = vector.broadcast %cst_30 : f32 to vector<8x256xf32>
    %41 = arith.maximumf %39, %40 : vector<8x256xf32>
    %42 = arith.truncf %41 : vector<8x256xf32> to vector<8x256xbf16>
    %c0_31 = arith.constant 0 : index
    %c0_32 = arith.constant 0 : index
    %43 = vector.load %arg12[%c0_31, %c0_32] : memref<256x512xbf16, #tpu.memory_space<vmem>>, vector<256x512xbf16>
    %cst_33 = arith.constant dense<0.000000e+00> : vector<8x512xf32>
    %44 = tpu.matmul %42, %43, %cst_33 {dimension_numbers = #tpu.dot_dimension_numbers<[1], [0], [0], [1], [0, 0, 1, 1], [], []>} : vector<8x256xbf16>, vector<256x512xbf16>, vector<8x512xf32> -> vector<8x512xf32>
    %c0_34 = arith.constant 0 : index
    %c0_35 = arith.constant 0 : index
    %45 = vector.load %arg13[%c0_34, %c0_35] : memref<1x512xf32, #tpu.memory_space<vmem>>, vector<1x512xf32>
    %46 = vector.broadcast %45 : vector<1x512xf32> to vector<8x512xf32>
    %47 = arith.addf %44, %46 : vector<8x512xf32>
    %cst_36 = arith.constant 0.000000e+00 : f32
    %48 = vector.broadcast %cst_36 : f32 to vector<8x512xf32>
    %49 = arith.maximumf %47, %48 : vector<8x512xf32>
    %50 = arith.truncf %49 : vector<8x512xf32> to vector<8x512xbf16>
    %c0_37 = arith.constant 0 : index
    %c0_38 = arith.constant 0 : index
    %51 = vector.load %arg14[%c0_37, %c0_38] : memref<512x128xbf16, #tpu.memory_space<vmem>>, vector<512x128xbf16>
    %cst_39 = arith.constant dense<0.000000e+00> : vector<8x128xf32>
    %52 = tpu.matmul %50, %51, %cst_39 {dimension_numbers = #tpu.dot_dimension_numbers<[1], [0], [0], [1], [0, 0, 1, 1], [], []>} : vector<8x512xbf16>, vector<512x128xbf16>, vector<8x128xf32> -> vector<8x128xf32>
    %c0_40 = arith.constant 0 : index
    %c0_41 = arith.constant 0 : index
    %53 = vector.load %arg15[%c0_40, %c0_41] : memref<1x128xf32, #tpu.memory_space<vmem>>, vector<1x128xf32>
    %54 = vector.broadcast %53 : vector<1x128xf32> to vector<8x128xf32>
    %55 = arith.addf %52, %54 : vector<8x128xf32>
    %c0_42 = arith.constant 0 : index
    %c0_43 = arith.constant 0 : index
    %56 = vector.load %arg16[%c0_42, %c0_43] : memref<8x128xf32, #tpu.memory_space<vmem>>, vector<8x128xf32>
    tpu.vector_store %arg16[%c0_42, %c0_43], %55 {strides = array<i32>} : memref<8x128xf32, #tpu.memory_space<vmem>>, vector<8x128xf32>,
    return
  }
  func.func @transform_0(%arg0: i32) -> (i32, i32) {
    %c0_i32 = arith.constant 0 : i32
    %c0_i32_0 = arith.constant 0 : i32
    return %arg0, %c0_i32 : i32, i32
  }
  func.func @transform_1(%arg0: i32) -> (i32, i32) {
    %c0_i32 = arith.constant 0 : i32
    %c0_i32_0 = arith.constant 0 : i32
    return %arg0, %c0_i32 : i32, i32
  }
  func.func @transform_2(%arg0: i32) -> (i32, i32) {
    %c0_i32 = arith.constant 0 : i32
    %c0_i32_0 = arith.constant 0 : i32
    %c0_i32_1 = arith.constant 0 : i32
    return %c0_i32, %c0_i32_0 : i32, i32
  }
  func.func @transform_3(%arg0: i32) -> (i32, i32) {
    %c0_i32 = arith.constant 0 : i32
    %c0_i32_0 = arith.constant 0 : i32
    %c0_i32_1 = arith.constant 0 : i32
    return %c0_i32, %c0_i32_0 : i32, i32
  }
  func.func @transform_4(%arg0: i32) -> (i32, i32) {
    %c0_i32 = arith.constant 0 : i32
    %c0_i32_0 = arith.constant 0 : i32
    %c0_i32_1 = arith.constant 0 : i32
    return %c0_i32, %c0_i32_0 : i32, i32
  }
  func.func @transform_5(%arg0: i32) -> (i32, i32) {
    %c0_i32 = arith.constant 0 : i32
    %c0_i32_0 = arith.constant 0 : i32
    %c0_i32_1 = arith.constant 0 : i32
    return %c0_i32, %c0_i32_0 : i32, i32
  }
  func.func @transform_6(%arg0: i32) -> (i32, i32) {
    %c0_i32 = arith.constant 0 : i32
    %c0_i32_0 = arith.constant 0 : i32
    %c0_i32_1 = arith.constant 0 : i32
    return %c0_i32, %c0_i32_0 : i32, i32
  }
  func.func @transform_7(%arg0: i32) -> (i32, i32) {
    %c0_i32 = arith.constant 0 : i32
    %c0_i32_0 = arith.constant 0 : i32
    %c0_i32_1 = arith.constant 0 : i32
    return %c0_i32, %c0_i32_0 : i32, i32
  }
  func.func @transform_8(%arg0: i32) -> (i32, i32) {
    %c0_i32 = arith.constant 0 : i32
    %c0_i32_0 = arith.constant 0 : i32
    %c0_i32_1 = arith.constant 0 : i32
    return %c0_i32, %c0_i32_0 : i32, i32
  }
  func.func @transform_9(%arg0: i32) -> (i32, i32) {
    %c0_i32 = arith.constant 0 : i32
    %c0_i32_0 = arith.constant 0 : i32
    %c0_i32_1 = arith.constant 0 : i32
    return %c0_i32, %c0_i32_0 : i32, i32
  }
  func.func @transform_10(%arg0: i32) -> (i32, i32) {
    %c0_i32 = arith.constant 0 : i32
    %c0_i32_0 = arith.constant 0 : i32
    %c0_i32_1 = arith.constant 0 : i32
    return %c0_i32, %c0_i32_0 : i32, i32
  }
  func.func @transform_11(%arg0: i32) -> (i32, i32) {
    %c0_i32 = arith.constant 0 : i32
    %c0_i32_0 = arith.constant 0 : i32
    %c0_i32_1 = arith.constant 0 : i32
    return %c0_i32, %c0_i32_0 : i32, i32
  }
  func.func @transform_12(%arg0: i32) -> (i32, i32) {
    %c0_i32 = arith.constant 0 : i32
    %c0_i32_0 = arith.constant 0 : i32
    %c0_i32_1 = arith.constant 0 : i32
    return %c0_i32, %c0_i32_0 : i32, i32
  }
  func.func @transform_13(%arg0: i32) -> (i32, i32) {
    %c0_i32 = arith.constant 0 : i32
    %c0_i32_0 = arith.constant 0 : i32
    %c0_i32_1 = arith.constant 0 : i32
    return %c0_i32, %c0_i32_0 : i32, i32
  }
  func.func @transform_14(%arg0: i32) -> (i32, i32) {
    %c0_i32 = arith.constant 0 : i32
    %c0_i32_0 = arith.constant 0 : i32
    %c0_i32_1 = arith.constant 0 : i32
    return %c0_i32, %c0_i32_0 : i32, i32
  }
  func.func @transform_15(%arg0: i32) -> (i32, i32) {
    %c0_i32 = arith.constant 0 : i32
    %c0_i32_0 = arith.constant 0 : i32
    return %arg0, %c0_i32 : i32, i32
  }
  func.func @transform_16(%arg0: i32) -> (i32, i32) {
    %c0_i32 = arith.constant 0 : i32
    %c0_i32_0 = arith.constant 0 : i32
    return %arg0, %c0_i32 : i32, i32
  }
}

</mosaic_0001>

<bundles_post_ra>
// kernel: tpu_custom_call.1
= control target key start
LH: loop header
LB: loop body
LE: loop exit
PB: predicated region body
PF: predicated region fallthrough
CT: control target
= control target key end

     0   :  { %s3509_s0 = inlined_call_operand.hbm [shape: bf16[8,128], index: 0, kind: input, shape index: {}]   ;;  %s3510_s1 = inlined_call_operand.hbm [shape: f32[8,64], index: 1, kind: input, shape index: {}]   ;;  %s3511_s2 = inlined_call_operand.hbm [shape: bf16[128,512], index: 2, kind: input, shape index: {}]   ;;  %s3512_s3 = inlined_call_operand.vmem [shape: f32[1,512], index: 3, kind: input, shape index: {}]   ;;  %s3513_s4 = inlined_call_operand.hbm [shape: bf16[512,256], index: 4, kind: input, shape index: {}]   ;;  %s3514_s5 = inlined_call_operand.vmem [shape: f32[1,256], index: 5, kind: input, shape index: {}]   ;;  %s3515_s6 = inlined_call_operand.hbm [shape: bf16[256,128], index: 6, kind: input, shape index: {}]   ;;  %s3516_s7 = inlined_call_operand.vmem [shape: f32[1,128], index: 7, kind: input, shape index: {}]   ;;  %s3517_s8 = inlined_call_operand.hbm [shape: bf16[64,256], index: 8, kind: input, shape index: {}]   ;;  %s3518_s9 = inlined_call_operand.hbm [shape: bf16[128,256], index: 9, kind: input, shape index: {}]   ;;  %s3519_s10 = inlined_call_operand.vmem [shape: f32[1,256], index: 10, kind: input, shape index: {}]   ;;  %s3520_s11 = inlined_call_operand.hbm [shape: bf16[256,512], index: 11, kind: input, shape index: {}]   ;;  %s3521_s12 = inlined_call_operand.vmem [shape: f32[1,512], index: 12, kind: input, shape index: {}]   ;;  %s3522_s13 = inlined_call_operand.hbm [shape: bf16[512,128], index: 13, kind: input, shape index: {}]   ;;  %s3523_s14 = inlined_call_operand.vmem [shape: f32[1,128], index: 14, kind: input, shape index: {}]   ;;  %s3524_s15 = inlined_call_operand.hbm [shape: f32[8,128], index: 15, kind: output, shape index: {0}]   ;;  %s3525_s16 = inlined_call_operand.hbm [shape: f32[8,128], index: 16, kind: output, shape index: {1}]  }
   0x1   :  { %3527 = sst [smem:[#allocation27_spill]] %s3509_s0 }
   0x2   :  { %22 = vsyncpa [#allocation3], 0 }
   0x3   :  { %23 = vsyncpa [#allocation6], 0 }
   0x4   :  { %24 = vsyncpa [#allocation9], 0 }
   0x5   :  { %25 = vsyncpa [#allocation12], 0 }
   0x6   :  { %26 = vsyncpa [#allocation15], 0 }
   0x7   :  { %27 = vsyncpa [#allocation4], 0 }
   0x8   :  { %28 = vsyncpa [#allocation19], 0  ;;  %s3175_s21 = smov [#allocation5]   ;;  %s3176_s23 = smov [#allocation8]  }
   0x9   :  { %s45_s22 = sshll.u32 %s3175_s21, 4  ;;  %s68_s24 = sshll.u32 %s3176_s23, 4  ;;  %s46_s22 = int_to_ptr.vmem [resolvable:$true] %s45_s22  ;;  %s3278_s24 = int_to_ptr.vmem [resolvable:$true] %s68_s24 }
   0xa   :  { %s2919_s27 = scalar_lea.hbm %s3510_s1, 128 }
   0xb   :  { %p2920_p0 = scmp.ne.s32.totalorder %s3510_s1, %s2919_s27  ;;  %p2923_p1 = scmp.lt.u32.totalorder %s2919_s27, %s3510_s1 }
   0xd   :  { %p2925_p2 = pnand %p2923_p1, %p2920_p0 }
   0xf   :  { %2928 = shalt.err (!%p2925_p2)
}
  0x10   :  { %s2929_s17 = scalar_lea.vmem %s46_s22, 128  ;;  %p2934_p4 = scmp.lt.s32.totalorder %s46_s22, %s46_s22 }
  0x11   :  { %p2930_p3 = scmp.ne.s32.totalorder %s46_s22, %s2929_s17  ;;  %p2935_p5 = scmp.lt.s32.totalorder %s2929_s17, %s2929_s17 }
  0x13   :  { %p2936_p6 = por %p2935_p5, %p2934_p4 }
  0x15   :  { %p2937_p7 = pnand %p2936_p6, %p2930_p3 }
  0x17   :  { %2940 = shalt.err (!%p2937_p7)
}
  0x18   :  { %48 = dma.hbm_to_vmem [thread:$0]  %s3510_s1, 128, %s46_s22, [#allocation6]  }
  0x19   :  { %s2941_s23 = scalar_lea.hbm %s3513_s4, 8192 }
  0x1a   :  { %p2942_p8 = scmp.ne.s32.totalorder %s3513_s4, %s2941_s23  ;;  %p2945_p9 = scmp.lt.u32.totalorder %s2941_s23, %s3513_s4 }
  0x1c   :  { %p2947_p10 = pnand %p2945_p9, %p2942_p8 }
  0x1e   :  { %2950 = shalt.err (!%p2947_p10)
}
  0x1f   :  { %s2951_s29 = scalar_lea.vmem %s3278_s24, 8192  ;;  %p2956_p12 = scmp.lt.s32.totalorder %s3278_s24, %s3278_s24 }
  0x20   :  { %p2952_p11 = scmp.ne.s32.totalorder %s3278_s24, %s2951_s29  ;;  %p2957_p13 = scmp.lt.s32.totalorder %s2951_s29, %s2951_s29 }
  0x22   :  { %p2958_p0 = por %p2957_p13, %p2956_p12 }
  0x24   :  { %p2959_p1 = pnand %p2958_p0, %p2952_p11 }
  0x26   :  { %2962 = shalt.err (!%p2959_p1)
}
  0x27   :  { %s3177_s1 = smov 128   ;;  %s3178_s22 = smov 8  }
  0x28   :  { %74 = dma.hbm_to_vmem [thread:$0]  %s3513_s4, 8192, %s3278_s24, [#allocation9], %s3177_s1, %s3177_s1, %s3178_s22  }
  0x29   :  { %s3179_s17 = smov [#allocation11]   ;;  %s2963_s21 = scalar_lea.hbm %s3517_s8, 1024 }
  0x2a   :  { %s96_s18 = sshll.u32 %s3179_s17, 4  ;;  %p2964_p2 = scmp.ne.s32.totalorder %s3517_s8, %s2963_s21  ;;  %s97_s18 = int_to_ptr.vmem [resolvable:$true] %s96_s18 }
  0x2b   :  { %p2967_p3 = scmp.lt.u32.totalorder %s2963_s21, %s3517_s8 }
  0x2d   :  { %p2969_p4 = pnand %p2967_p3, %p2964_p2 }
  0x2f   :  { %2972 = shalt.err (!%p2969_p4)
}
  0x30   :  { %s2973_s28 = scalar_lea.vmem %s97_s18, 1024  ;;  %p2978_p6 = scmp.lt.s32.totalorder %s97_s18, %s97_s18 }
  0x31   :  { %p2974_p5 = scmp.ne.s32.totalorder %s97_s18, %s2973_s28  ;;  %p2979_p7 = scmp.lt.s32.totalorder %s2973_s28, %s2973_s28 }
  0x33   :  { %p2980_p8 = por %p2979_p7, %p2978_p6 }
  0x35   :  { %p2981_p9 = pnand %p2980_p8, %p2974_p5 }
  0x37   :  { %2984 = shalt.err (!%p2981_p9)
}
  0x38   :  { %102 = dma.hbm_to_vmem [thread:$0]  %s3517_s8, 1024, %s97_s18, [#allocation12], %s3177_s1, %s3177_s1, %s3178_s22  }
  0x39   :  { %s3180_s29 = smov [#allocation14]   ;;  %s3181_s0 = smov [#allocation2]  }
  0x3a   :  { %s122_s30 = sshll.u32 %s3180_s29, 4  ;;  %s35_s17 = sshll.u32 %s3181_s0, 4  ;;  %s123_s30 = int_to_ptr.vmem [resolvable:$true] %s122_s30  ;;  %s36_s17 = int_to_ptr.vmem [resolvable:$true] %s35_s17 }
  0x3b   :  { %s2985_s21 = scalar_lea.hbm %s3520_s11, 8192 }
  0x3c   :  { %p2986_p10 = scmp.ne.s32.totalorder %s3520_s11, %s2985_s21  ;;  %p2989_p11 = scmp.lt.u32.totalorder %s2985_s21, %s3520_s11 }
  0x3e   :  { %p2991_p12 = pnand %p2989_p11, %p2986_p10 }
  0x40   :  { %2994 = shalt.err (!%p2991_p12)
}
  0x41   :  { %s2995_s8 = scalar_lea.vmem %s123_s30, 8192  ;;  %p3000_p0 = scmp.lt.s32.totalorder %s123_s30, %s123_s30 }
  0x42   :  { %p2996_p13 = scmp.ne.s32.totalorder %s123_s30, %s2995_s8  ;;  %p3001_p1 = scmp.lt.s32.totalorder %s2995_s8, %s2995_s8 }
  0x44   :  { %p3002_p2 = por %p3001_p1, %p3000_p0 }
  0x46   :  { %p3003_p3 = pnand %p3002_p2, %p2996_p13 }
  0x48   :  { %3006 = shalt.err (!%p3003_p3)
}
  0x49   :  { %s3182_s18 = smov 256   ;;  %s3183_s28 = smov 16  }
  0x4a   :  { %128 = dma.hbm_to_vmem [thread:$0]  %s3520_s11, 8192, %s123_s30, [#allocation15], %s3182_s18, %s3182_s18, %s3183_s28  }
  0x4b   :  { %s3528_s19 = sld [smem:[#allocation27_spill]] }
  0x51   :  { %s3007_s20 = scalar_lea.hbm %s3528_s19, 64 }
  0x52   :  { %p3008_p4 = scmp.ne.s32.totalorder %s3528_s19, %s3007_s20  ;;  %p3011_p5 = scmp.lt.u32.totalorder %s3007_s20, %s3528_s19 }
  0x54   :  { %p3013_p6 = pnand %p3011_p5, %p3008_p4 }
  0x56   :  { %3016 = shalt.err (!%p3013_p6)
}
  0x57   :  { %s3017_s27 = scalar_lea.vmem %s36_s17, 64  ;;  %p3022_p8 = scmp.lt.s32.totalorder %s36_s17, %s36_s17 }
  0x58   :  { %p3018_p7 = scmp.ne.s32.totalorder %s36_s17, %s3017_s27  ;;  %p3023_p9 = scmp.lt.s32.totalorder %s3017_s27, %s3017_s27 }
  0x5a   :  { %p3024_p10 = por %p3023_p9, %p3022_p8 }
  0x5c   :  { %p3025_p11 = pnand %p3024_p10, %p3018_p7 }
  0x5e   :  { %3028 = shalt.err (!%p3025_p11)
}
  0x5f   :  { %38 = dma.hbm_to_vmem [thread:$0]  %s3528_s19, 64, %s36_s17, [#allocation3]  }
  0x60   :  { %s3184_s8 = smov [#allocation7]   ;;  %s3185_s24 = smov [#allocation10]  }
  0x61   :  { %s54_s4 = sshll.u32 %s3184_s8, 4  ;;  %s82_s29 = sshll.u32 %s3185_s24, 4  ;;  %s55_s4 = int_to_ptr.vmem [resolvable:$true] %s54_s4  ;;  %s83_s29 = int_to_ptr.vmem [resolvable:$true] %s82_s29 }
  0x62   :  { %s3029_s21 = scalar_lea.hbm %s3511_s2, 4096 }
  0x63   :  { %p3030_p12 = scmp.ne.s32.totalorder %s3511_s2, %s3029_s21  ;;  %p3033_p13 = scmp.lt.u32.totalorder %s3029_s21, %s3511_s2 }
  0x65   :  { %p3035_p0 = pnand %p3033_p13, %p3030_p12 }
  0x67   :  { %3038 = shalt.err (!%p3035_p0)
}
  0x68   :  { %s3039_s17 = scalar_lea.vmem %s55_s4, 4096  ;;  %p3044_p2 = scmp.lt.s32.totalorder %s55_s4, %s55_s4 }
  0x69   :  { %p3040_p1 = scmp.ne.s32.totalorder %s55_s4, %s3039_s17  ;;  %p3045_p3 = scmp.lt.s32.totalorder %s3039_s17, %s3039_s17 }
  0x6b   :  { %p3046_p4 = por %p3045_p3, %p3044_p2 }
  0x6d   :  { %p3047_p5 = pnand %p3046_p4, %p3040_p1 }
  0x6f   :  { %3050 = shalt.err (!%p3047_p5)
}
  0x70   :  { %60 = dma.hbm_to_vmem [thread:$0]  %s3511_s2, 4096, %s55_s4, [#allocation6], %s3182_s18, %s3182_s18, %s3183_s28  }
  0x71   :  { %s3051_s24 = scalar_lea.hbm %s3515_s6, 2048 }
  0x72   :  { %p3052_p6 = scmp.ne.s32.totalorder %s3515_s6, %s3051_s24  ;;  %p3055_p7 = scmp.lt.u32.totalorder %s3051_s24, %s3515_s6 }
  0x74   :  { %p3057_p8 = pnand %p3055_p7, %p3052_p6 }
  0x76   :  { %3060 = shalt.err (!%p3057_p8)
}
  0x77   :  { %s3061_s25 = scalar_lea.vmem %s83_s29, 2048  ;;  %p3066_p10 = scmp.lt.s32.totalorder %s83_s29, %s83_s29 }
  0x78   :  { %p3062_p9 = scmp.ne.s32.totalorder %s83_s29, %s3061_s25  ;;  %p3067_p11 = scmp.lt.s32.totalorder %s3061_s25, %s3061_s25 }
  0x7a   :  { %p3068_p12 = por %p3067_p11, %p3066_p10 }
  0x7c   :  { %p3069_p13 = pnand %p3068_p12, %p3062_p9 }
  0x7e   :  { %3072 = shalt.err (!%p3069_p13)
}
  0x7f   :  { %s3186_s2 = smov 64   ;;  %s3187_s18 = smov 4  }
  0x80   :  { %88 = dma.hbm_to_vmem [thread:$0]  %s3515_s6, 2048, %s83_s29, [#allocation9], %s3186_s2, %s3186_s2, %s3187_s18  }
  0x81   :  { %s3188_s26 = smov [#allocation13]   ;;  %s3189_s17 = smov [#allocation16]  }
  0x82   :  { %s108_s27 = sshll.u32 %s3188_s26, 4  ;;  %s136_s19 = sshll.u32 %s3189_s17, 4  ;;  %s109_s27 = int_to_ptr.vmem [resolvable:$true] %s108_s27  ;;  %s137_s19 = int_to_ptr.vmem [resolvable:$true] %s136_s19 }
  0x83   :  { %s3073_s8 = scalar_lea.hbm %s3518_s9, 2048 }
  0x84   :  { %p3074_p0 = scmp.ne.s32.totalorder %s3518_s9, %s3073_s8  ;;  %p3077_p1 = scmp.lt.u32.totalorder %s3073_s8, %s3518_s9 }
  0x86   :  { %p3079_p2 = pnand %p3077_p1, %p3074_p0 }
  0x88   :  { %3082 = shalt.err (!%p3079_p2)
}
  0x89   :  { %s3083_s6 = scalar_lea.vmem %s109_s27, 2048  ;;  %p3088_p4 = scmp.lt.s32.totalorder %s109_s27, %s109_s27 }
  0x8a   :  { %p3084_p3 = scmp.ne.s32.totalorder %s109_s27, %s3083_s6  ;;  %p3089_p5 = scmp.lt.s32.totalorder %s3083_s6, %s3083_s6 }
  0x8c   :  { %p3090_p6 = por %p3089_p5, %p3088_p4 }
  0x8e   :  { %p3091_p7 = pnand %p3090_p6, %p3084_p3 }
  0x90   :  { %3094 = shalt.err (!%p3091_p7)
}
  0x91   :  { %114 = dma.hbm_to_vmem [thread:$0]  %s3518_s9, 2048, %s109_s27, [#allocation12], %s3177_s1, %s3177_s1, %s3178_s22  }
  0x92   :  { %s3095_s4 = scalar_lea.hbm %s3522_s13, 4096 }
  0x93   :  { %p3096_p8 = scmp.ne.s32.totalorder %s3522_s13, %s3095_s4  ;;  %p3099_p9 = scmp.lt.u32.totalorder %s3095_s4, %s3522_s13 }
  0x95   :  { %p3101_p10 = pnand %p3099_p9, %p3096_p8 }
  0x97   :  { %3104 = shalt.err (!%p3101_p10)
}
  0x98   :  { %s3105_s8 = scalar_lea.vmem %s137_s19, 4096  ;;  %p3110_p12 = scmp.lt.s32.totalorder %s137_s19, %s137_s19 }
  0x99   :  { %p3106_p11 = scmp.ne.s32.totalorder %s137_s19, %s3105_s8  ;;  %p3111_p13 = scmp.lt.s32.totalorder %s3105_s8, %s3105_s8 }
  0x9b   :  { %p3112_p0 = por %p3111_p13, %p3110_p12 }
  0x9d   :  { %p3113_p1 = pnand %p3112_p0, %p3106_p11 }
  0x9f   :  { %3116 = shalt.err (!%p3113_p1)
}
  0xa0   :  { %142 = dma.hbm_to_vmem [thread:$0]  %s3522_s13, 4096, %s137_s19, [#allocation15], %s3186_s2, %s3186_s2, %s3187_s18  }
  0xa1   :  { %3161 = dma.done.wait [#allocation3], 64  }
  0xa2   :  { %3162 = vsyncadd [#allocation3], 4294967232 }
  0xa3   :  { %3163 = dma.done.wait [#allocation6], 4224  }
  0xa4   :  { %3164 = vsyncadd [#allocation6], 4294963072 }
  0xa5   :  { %3165 = dma.done.wait [#allocation9], 10240  }
  0xa6   :  { %3166 = vsyncadd [#allocation9], 4294957056 }
  0xa7   :  { %3167 = dma.done.wait [#allocation12], 3072  }
  0xa8   :  { %3168 = vsyncadd [#allocation12], 4294964224 }
  0xa9   :  { %3169 = dma.done.wait [#allocation15], 12288  }
  0xaa   :  { %3170 = vsyncadd [#allocation15], 4294955008  ;;  %v3190_v0 = vmov 0   ;;  %v2593_v1 = vld [vmem:[#allocation7 + $0x4] ss:$16 sps:$4 sm:$0xff]   ;;  %vm1332_vm0 = vcmask 523264  }
  0xab   :  { %420 = vmatprep.mubr.bf16.mxu0 %v3190_v0  ;;  %461 = vmatprep.mubr.bf16.mxu1 %v3190_v0  ;;  %v2595_v2 = vld [vmem:[#allocation7] ss:$16 sps:$4 sm:$0xff]   ;;  %v2596_v3 = vld [vmem:[#allocation7 + $0x24] ss:$16 sps:$4 sm:$0xff]   ;;  %v2617_v10 = vld [vmem:[#allocation7 + $0xc] ss:$16 sps:$4 sm:$0xff]  }
  0xac   :  { %388 = vmatprep.subr.bf16.mxu0 %v2593_v1  ;;  %v2598_v4 = vld [vmem:[#allocation7 + $0x20] ss:$16 sps:$4 sm:$0xff]   ;;  %v2599_v5 = vld [vmem:[#allocation7 + $0x44] ss:$16 sps:$4 sm:$0xff]   ;;  %v2619_v11 = vld [vmem:[#allocation7 + $0x8] ss:$16 sps:$4 sm:$0xff]   ;;  %429 = vmatprep.subr.bf16.mxu1 %v2617_v10 }
  0xad   :  { %389 = vmatpush1.bf16.msra.mxu0 %v2595_v2  ;;  %v2601_v6 = vld [vmem:[#allocation7 + $0x40] ss:$16 sps:$4 sm:$0xff]   ;;  %v2602_v7 = vld [vmem:[#allocation7 + $0x64] ss:$16 sps:$4 sm:$0xff]   ;;  %v2620_v12 = vld [vmem:[#allocation7 + $0x2c] ss:$16 sps:$4 sm:$0xff]   ;;  %430 = vmatpush1.bf16.msra.mxu1 %v2619_v11 }
  0xae   :  { %390 = vmatprep.subr.bf16.mxu0 %v2596_v3  ;;  %v2604_v8 = vld [vmem:[#allocation7 + $0x60] ss:$16 sps:$4 sm:$0xff]   ;;  %v2605_v9 = vld [vmem:[#allocation7 + $0x84] ss:$16 sps:$4 sm:$0xff]   ;;  %v2622_v14 = vld [vmem:[#allocation7 + $0x28] ss:$16 sps:$4 sm:$0xff]   ;;  %431 = vmatprep.subr.bf16.mxu1 %v2620_v12 }
  0xaf   :  { %v2607_v13 = vld [vmem:[#allocation7 + $0x80] ss:$16 sps:$4 sm:$0xff]   ;;  %v2623_v15 = vld [vmem:[#allocation7 + $0x4c] ss:$16 sps:$4 sm:$0xff]   ;;  %v2608_v16 = vld [vmem:[#allocation7 + $0xa4] ss:$16 sps:$4 sm:$0xff]  }
  0xb0   :  { %v2610_v17 = vld [vmem:[#allocation7 + $0xa0] ss:$16 sps:$4 sm:$0xff]   ;;  %v2625_v18 = vld [vmem:[#allocation7 + $0x48] ss:$16 sps:$4 sm:$0xff]   ;;  %v2626_v19 = vld [vmem:[#allocation7 + $0x6c] ss:$16 sps:$4 sm:$0xff]  }
  0xb1   :  { %391 = vmatpush1.bf16.msra.mxu0 %v2598_v4  ;;  %432 = vmatpush1.bf16.msra.mxu1 %v2622_v14  ;;  %v2611_v20 = vld [vmem:[#allocation7 + $0xc4] ss:$16 sps:$4 sm:$0xff]   ;;  %v2613_v21 = vld [vmem:[#allocation7 + $0xc0] ss:$16 sps:$4 sm:$0xff]   ;;  %v2628_v22 = vld [vmem:[#allocation7 + $0x68] ss:$16 sps:$4 sm:$0xff]  }
  0xb2   :  { %392 = vmatprep.subr.bf16.mxu0 %v2599_v5  ;;  %433 = vmatprep.subr.bf16.mxu1 %v2623_v15  ;;  %v2629_v23 = vld [vmem:[#allocation7 + $0x8c] ss:$16 sps:$4 sm:$0xff]   ;;  %v2614_v24 = vld [vmem:[#allocation7 + $0xe4] ss:$16 sps:$4 sm:$0xff]   ;;  %v2616_v25 = vld [vmem:[#allocation7 + $0xe0] ss:$16 sps:$4 sm:$0xff]  }
  0xb3   :  { %v2631_v26 = vld [vmem:[#allocation7 + $0x88] ss:$16 sps:$4 sm:$0xff]   ;;  %v2632_v27 = vld [vmem:[#allocation7 + $0xac] ss:$16 sps:$4 sm:$0xff]   ;;  %v3416_v29 = vld [vmem:[#allocation2] sm:$0xf] }
  0xb4   :  { %v2643_v28 = vld [vmem:[#allocation8 + $0x4] ss:$8 sps:$4 sm:$0xff]   ;;  %v2634_v30 = vld [vmem:[#allocation7 + $0xa8] ss:$16 sps:$4 sm:$0xff]   ;;  %v2646_v33 = vld [vmem:[#allocation8 + $0x14] ss:$8 sps:$4 sm:$0xff]  }
  0xb5   :  { %393 = vmatpush1.bf16.msra.mxu0 %v2601_v6  ;;  %434 = vmatpush1.bf16.msra.mxu1 %v2625_v18  ;;  %v2635_v31 = vld [vmem:[#allocation7 + $0xcc] ss:$16 sps:$4 sm:$0xff]   ;;  %v2641_v32 = vld [vmem:[#allocation8] ss:$8 sps:$4 sm:$0xff]   ;;  %v2644_v36 = vld [vmem:[#allocation8 + $0x10] ss:$8 sps:$4 sm:$0xff]  }
  0xb6   :  { %394 = vmatprep.subr.bf16.mxu0 %v2602_v7  ;;  %435 = vmatprep.subr.bf16.mxu1 %v2626_v19  ;;  %v2637_v34 = vld [vmem:[#allocation7 + $0xc8] ss:$16 sps:$4 sm:$0xff]   ;;  %v2638_v35 = vld [vmem:[#allocation7 + $0xec] ss:$16 sps:$4 sm:$0xff]   ;;  %v2737_v4 = vld [vmem:[#allocation10 + $0x40] sm:$0xff]  }
  0xb7   :  { %v2649_v37 = vld [vmem:[#allocation8 + $0x24] ss:$8 sps:$4 sm:$0xff]   ;;  %v2640_v38 = vld [vmem:[#allocation7 + $0xe8] ss:$16 sps:$4 sm:$0xff]   ;;  %v2652_v40 = vld [vmem:[#allocation8 + $0x34] ss:$8 sps:$4 sm:$0xff]  }
  0xb8   :  { %v2647_v39 = vld [vmem:[#allocation8 + $0x20] ss:$8 sps:$4 sm:$0xff]   ;;  %v2650_v41 = vld [vmem:[#allocation8 + $0x30] ss:$8 sps:$4 sm:$0xff]   ;;  %v2655_v42 = vld [vmem:[#allocation8 + $0x44] ss:$8 sps:$4 sm:$0xff]  }
  0xb9   :  { %395 = vmatpush1.bf16.msra.mxu0 %v2604_v8  ;;  %436 = vmatpush1.bf16.msra.mxu1 %v2628_v22  ;;  %v2653_v43 = vld [vmem:[#allocation8 + $0x40] ss:$8 sps:$4 sm:$0xff]   ;;  %v2658_v44 = vld [vmem:[#allocation8 + $0x54] ss:$8 sps:$4 sm:$0xff]   ;;  %v2656_v45 = vld [vmem:[#allocation8 + $0x50] ss:$8 sps:$4 sm:$0xff]  }
  0xba   :  { %396 = vmatprep.subr.bf16.mxu0 %v2605_v9  ;;  %437 = vmatprep.subr.bf16.mxu1 %v2629_v23  ;;  %v2661_v46 = vld [vmem:[#allocation8 + $0x64] ss:$8 sps:$4 sm:$0xff]   ;;  %v2659_v47 = vld [vmem:[#allocation8 + $0x60] ss:$8 sps:$4 sm:$0xff]   ;;  %v2664_v48 = vld [vmem:[#allocation8 + $0x74] ss:$8 sps:$4 sm:$0xff]  }
  0xbb   :  { %v2662_v49 = vld [vmem:[#allocation8 + $0x70] ss:$8 sps:$4 sm:$0xff]   ;;  %v2667_v50 = vld [vmem:[#allocation8 + $0x84] ss:$8 sps:$4 sm:$0xff]   ;;  %v2665_v51 = vld [vmem:[#allocation8 + $0x80] ss:$8 sps:$4 sm:$0xff]  }
  0xbc   :  { %v2670_v52 = vld [vmem:[#allocation8 + $0x94] ss:$8 sps:$4 sm:$0xff]   ;;  %v2668_v53 = vld [vmem:[#allocation8 + $0x90] ss:$8 sps:$4 sm:$0xff]   ;;  %v2673_v54 = vld [vmem:[#allocation8 + $0xa4] ss:$8 sps:$4 sm:$0xff]  }
  0xbd   :  { %397 = vmatpush1.bf16.msra.mxu0 %v2607_v13  ;;  %438 = vmatpush1.bf16.msra.mxu1 %v2631_v26  ;;  %v2671_v55 = vld [vmem:[#allocation8 + $0xa0] ss:$8 sps:$4 sm:$0xff]   ;;  %v2676_v56 = vld [vmem:[#allocation8 + $0xb4] ss:$8 sps:$4 sm:$0xff]   ;;  %v2674_v57 = vld [vmem:[#allocation8 + $0xb0] ss:$8 sps:$4 sm:$0xff]  }
  0xbe   :  { %398 = vmatprep.subr.bf16.mxu0 %v2608_v16  ;;  %439 = vmatprep.subr.bf16.mxu1 %v2632_v27  ;;  %v2679_v58 = vld [vmem:[#allocation8 + $0xc4] ss:$8 sps:$4 sm:$0xff]   ;;  %v2677_v59 = vld [vmem:[#allocation8 + $0xc0] ss:$8 sps:$4 sm:$0xff]   ;;  %v2682_v60 = vld [vmem:[#allocation8 + $0xd4] ss:$8 sps:$4 sm:$0xff]   ;;  %v208_v16 = vlaneseq }
  0xbf   :  { %v2680_v61 = vld [vmem:[#allocation8 + $0xd0] ss:$8 sps:$4 sm:$0xff]   ;;  %v2685_v62 = vld [vmem:[#allocation8 + $0xe4] ss:$8 sps:$4 sm:$0xff]   ;;  %v2683_v63 = vld [vmem:[#allocation8 + $0xe0] ss:$8 sps:$4 sm:$0xff]  }
  0xc0   :  { %v2688_v1 = vld [vmem:[#allocation8 + $0xf4] ss:$8 sps:$4 sm:$0xff]   ;;  %v2686_v2 = vld [vmem:[#allocation8 + $0xf0] ss:$8 sps:$4 sm:$0xff]   ;;  %v2691_v3 = vld [vmem:[#allocation8 + $0x104] ss:$8 sps:$4 sm:$0xff]  }
  0xc1   :  { %399 = vmatpush1.bf16.msra.mxu0 %v2610_v17  ;;  %440 = vmatpush1.bf16.msra.mxu1 %v2634_v30  ;;  %v2738_v5 = vld [vmem:[#allocation10] sm:$0xff]   ;;  %v2739_v6 = vld [vmem:[#allocation10 + $0x48] sm:$0xff]   ;;  %v2741_v8 = vld [vmem:[#allocation10 + $0x50] sm:$0xff]   ;;  %v3420_v17 = vshrl.u32 %v208_v16, 7 }
  0xc2   :  { %400 = vmatprep.subr.bf16.mxu0 %v2611_v20  ;;  %441 = vmatprep.subr.bf16.mxu1 %v2635_v31  ;;  %v2740_v7 = vld [vmem:[#allocation10 + $0x8] sm:$0xff]   ;;  %v2742_v9 = vld [vmem:[#allocation10 + $0x10] sm:$0xff]   ;;  %v2743_v10 = vld [vmem:[#allocation10 + $0x58] sm:$0xff]  }
  0xc3   :  { %v2744_v11 = vld [vmem:[#allocation10 + $0x18] sm:$0xff]   ;;  %v2745_v12 = vld [vmem:[#allocation10 + $0x60] sm:$0xff]   ;;  %v2747_v14 = vld [vmem:[#allocation10 + $0x68] sm:$0xff]   ;;  %v3423_v18 = vsub.s32 0, %v3420_v17  ;;  %v3431_v20 = vsub.s32 1, %v3420_v17 }
  0xc4   :  { %v2746_v13 = vld [vmem:[#allocation10 + $0x20] sm:$0xff]   ;;  %v2748_v15 = vld [vmem:[#allocation10 + $0x28] sm:$0xff]   ;;  %v3428_v19 = vld [vmem:[%s3512_s3] sm:$0xf] }
  0xc5   :  { %401 = vmatpush1.bf16.msra.mxu0 %v2613_v21  ;;  %442 = vmatpush1.bf16.msra.mxu1 %v2637_v34  ;;  %v211_v21 = vrot.slane %v3428_v19, %v3423_v18  ;;  %v215_v22 = vrot.slane %v3428_v19, %v3431_v20  ;;  %v2689_v34 = vld [vmem:[#allocation8 + $0x100] ss:$8 sps:$4 sm:$0xff]   ;;  %v2749_v16 = vld [vmem:[#allocation10 + $0x70] sm:$0xff]  }
  0xc6   :  { %402 = vmatprep.subr.bf16.mxu0 %v2614_v24  ;;  %443 = vmatprep.subr.bf16.mxu1 %v2638_v35 }
  0xc9   :  { %403 = vmatpush1.bf16.msra.mxu0 %v2616_v25  ;;  %444 = vmatpush1.bf16.msra.mxu1 %v2640_v38  ;;  %v2692_v38 = vld [vmem:[#allocation8 + $0x110] ss:$8 sps:$4 sm:$0xff]  }
  0xca   :  { %874 = vmatprep.subr.bf16.mxu0 %v2643_v28  ;;  %2503 = vmatprep.subr.bf16.mxu1 %v2737_v4  ;;  %v2725_v4 = vld [vmem:[#allocation8 + $0x1c0] ss:$8 sps:$4 sm:$0xff]  }
  0xcc   :  { %421 = vmatmul.mubr.bf16.vlgmr.msra.gmra.mrb[0].mxu0 %v3416_v29  ;;  %462 = vmatmul.mubr.bf16.vlgmr.msra.gmra.mrb[0].mxu1 %v3416_v29 }
  0xcd   :  { %875 = vmatpush1.bf16.msra.mxu0 %v2641_v32  ;;  %2504 = vmatpush3.bf16.msra.mxu1 %v2738_v5  ;;  %v222_v32 = vsub.s32 3, %v3420_v17  ;;  %v218_v5 = vsub.s32 2, %v3420_v17 }
  0xce   :  { %876 = vmatprep.subr.bf16.mxu0 %v2646_v33  ;;  %2505 = vmatprep.subr.bf16.mxu1 %v2739_v6  ;;  %v2730_v6 = vld [vmem:[#allocation8 + $0x1d4] ss:$8 sps:$4 sm:$0xff]  }
  0xd1   :  { %877 = vmatpush1.bf16.msra.mxu0 %v2644_v36  ;;  %2506 = vmatpush3.bf16.msra.mxu1 %v2740_v7  ;;  %v2694_v36 = vld [vmem:[#allocation8 + $0x114] ss:$8 sps:$4 sm:$0xff]   ;;  %v2728_v7 = vld [vmem:[#allocation8 + $0x1d0] ss:$8 sps:$4 sm:$0xff]  }
  0xd2   :  { %878 = vmatprep.subr.bf16.mxu0 %v2649_v37  ;;  %2507 = vmatprep.subr.bf16.mxu1 %v2741_v8  ;;  %v223_v37 = vrot.slane %v3428_v19, %v222_v32  ;;  %v219_v8 = vrot.slane %v3428_v19, %v218_v5  ;;  %v2752_v19 = vld [vmem:[#allocation10 + $0x38] sm:$0xff]  }
  0xd5   :  { %879 = vmatpush1.bf16.msra.mxu0 %v2647_v39  ;;  %2508 = vmatpush3.bf16.msra.mxu1 %v2742_v9  ;;  %v2697_v39 = vld [vmem:[#allocation8 + $0x124] ss:$8 sps:$4 sm:$0xff]  }
  0xd6   :  { %880 = vmatprep.subr.bf16.mxu0 %v2652_v40  ;;  %2509 = vmatprep.subr.bf16.mxu1 %v2743_v10  ;;  %v2733_v9 = vld [vmem:[#allocation8 + $0x1e4] ss:$8 sps:$4 sm:$0xff]   ;;  %v2731_v10 = vld [vmem:[#allocation8 + $0x1e0] ss:$8 sps:$4 sm:$0xff]  }
  0xd9   :  { %881 = vmatpush1.bf16.msra.mxu0 %v2650_v41  ;;  %2510 = vmatpush3.bf16.msra.mxu1 %v2744_v11 }
  0xda   :  { %882 = vmatprep.subr.bf16.mxu0 %v2655_v42  ;;  %2511 = vmatprep.subr.bf16.mxu1 %v2745_v12  ;;  %v2736_v12 = vld [vmem:[#allocation8 + $0x1f4] ss:$8 sps:$4 sm:$0xff]  }
  0xdd   :  { %883 = vmatpush1.bf16.msra.mxu0 %v2653_v43  ;;  %2512 = vmatpush3.bf16.msra.mxu1 %v2746_v13  ;;  %v2734_v13 = vld [vmem:[#allocation8 + $0x1f0] ss:$8 sps:$4 sm:$0xff]  }
  0xde   :  { %884 = vmatprep.subr.bf16.mxu0 %v2658_v44  ;;  %2513 = vmatprep.subr.bf16.mxu1 %v2747_v14  ;;  %v2695_v44 = vld [vmem:[#allocation8 + $0x120] ss:$8 sps:$4 sm:$0xff]  }
  0xe1   :  { %885 = vmatpush1.bf16.msra.mxu0 %v2656_v45  ;;  %2514 = vmatpush3.bf16.msra.mxu1 %v2748_v15 }
  0xe2   :  { %886 = vmatprep.subr.bf16.mxu0 %v2661_v46  ;;  %v2700_v46 = vld [vmem:[#allocation8 + $0x134] ss:$8 sps:$4 sm:$0xff]   ;;  %2515 = vmatprep.subr.bf16.mxu1 %v2749_v16  ;;  %v2810_v16 = vld [vmem:[#allocation14 + $0x68] ss:$16 sps:$4 sm:$0xff]  }
  0xe5   :  { %887 = vmatpush1.bf16.msra.mxu0 %v2659_v47 }
  0xe6   :  { %888 = vmatprep.subr.bf16.mxu0 %v2664_v48 }
  0xe9   :  { %889 = vmatpush1.bf16.msra.mxu0 %v2662_v49  ;;  %v2698_v49 = vld [vmem:[#allocation8 + $0x130] ss:$8 sps:$4 sm:$0xff]  }
  0xea   :  { %890 = vmatprep.subr.bf16.mxu0 %v2667_v50  ;;  %v2703_v50 = vld [vmem:[#allocation8 + $0x144] ss:$8 sps:$4 sm:$0xff]  }
  0xed   :  { %891 = vmatpush1.bf16.msra.mxu0 %v2665_v51  ;;  %v2701_v51 = vld [vmem:[#allocation8 + $0x140] ss:$8 sps:$4 sm:$0xff]  }
  0xee   :  { %892 = vmatprep.subr.bf16.mxu0 %v2670_v52  ;;  %v2706_v52 = vld [vmem:[#allocation8 + $0x154] ss:$8 sps:$4 sm:$0xff]  }
  0xf1   :  { %893 = vmatpush1.bf16.msra.mxu0 %v2668_v53  ;;  %v2704_v53 = vld [vmem:[#allocation8 + $0x150] ss:$8 sps:$4 sm:$0xff]  }
  0xf2   :  { %894 = vmatprep.subr.bf16.mxu0 %v2673_v54  ;;  %v2709_v54 = vld [vmem:[#allocation8 + $0x164] ss:$8 sps:$4 sm:$0xff]  }
  0xf5   :  { %895 = vmatpush1.bf16.msra.mxu0 %v2671_v55  ;;  %v2707_v55 = vld [vmem:[#allocation8 + $0x160] ss:$8 sps:$4 sm:$0xff]  }
  0xf6   :  { %896 = vmatprep.subr.bf16.mxu0 %v2676_v56  ;;  %v2712_v56 = vld [vmem:[#allocation8 + $0x174] ss:$8 sps:$4 sm:$0xff]  }
  0xf9   :  { %897 = vmatpush1.bf16.msra.mxu0 %v2674_v57  ;;  %v2710_v57 = vld [vmem:[#allocation8 + $0x170] ss:$8 sps:$4 sm:$0xff]  }
  0xfa   :  { %898 = vmatprep.subr.bf16.mxu0 %v2679_v58  ;;  %v2715_v58 = vld [vmem:[#allocation8 + $0x184] ss:$8 sps:$4 sm:$0xff]  }
  0xfd   :  { %899 = vmatpush1.bf16.msra.mxu0 %v2677_v59  ;;  %v2713_v59 = vld [vmem:[#allocation8 + $0x180] ss:$8 sps:$4 sm:$0xff]  }
  0xfe   :  { %900 = vmatprep.subr.bf16.mxu0 %v2682_v60  ;;  %v2718_v60 = vld [vmem:[#allocation8 + $0x194] ss:$8 sps:$4 sm:$0xff]  }
 0x101   :  { %901 = vmatpush1.bf16.msra.mxu0 %v2680_v61  ;;  %v2716_v61 = vld [vmem:[#allocation8 + $0x190] ss:$8 sps:$4 sm:$0xff]  }
 0x102   :  { %902 = vmatprep.subr.bf16.mxu0 %v2685_v62  ;;  %v2721_v62 = vld [vmem:[#allocation8 + $0x1a4] ss:$8 sps:$4 sm:$0xff]  }
 0x105   :  { %903 = vmatpush1.bf16.msra.mxu0 %v2683_v63  ;;  %v2719_v63 = vld [vmem:[#allocation8 + $0x1a0] ss:$8 sps:$4 sm:$0xff]  }
 0x106   :  { %904 = vmatprep.subr.bf16.mxu0 %v2688_v1  ;;  %v2724_v1 = vld [vmem:[#allocation8 + $0x1b4] ss:$8 sps:$4 sm:$0xff]  }
 0x109   :  { %905 = vmatpush1.bf16.msra.mxu0 %v2686_v2  ;;  %v2722_v2 = vld [vmem:[#allocation8 + $0x1b0] ss:$8 sps:$4 sm:$0xff]  }
 0x10a   :  { %915 = vmatprep.subr.bf16.mxu0 %v2691_v3  ;;  %v2727_v3 = vld [vmem:[#allocation8 + $0x1c4] ss:$8 sps:$4 sm:$0xff]  }
 0x19f   :  { %v422_v23 = vpop.f32.mrb[0].mxu0  ;;  %v463_v40 = vpop.f32.mrb[0].mxu1 }
 0x1a0   :  { %v423_v24 = vadd.f32 %v422_v23, %v211_v21  ;;  %v424_v25 = vpop.f32.mrb[1].mxu0  ;;  %v465_v41 = vpop.f32.mrb[1].mxu1  ;;  %v464_v11 = vadd.f32 %v463_v40, %v219_v8  ;;  %v2750_v21 = vld [vmem:[#allocation10 + $0x30] sm:$0xff]   ;;  %v2792_v8 = vld [vmem:[#allocation14 + $0x8] ss:$16 sps:$4 sm:$0xff]  }
 0x1a1   :  { %v425_v26 = vadd.f32 %v424_v25, %v215_v22  ;;  %v426_v27 = vpop.f32.mrb[2].mxu0  ;;  %v466_v42 = vadd.f32 %v465_v41, %v223_v37  ;;  %v467_v43 = vpop.f32.mrb[2].mxu1  ;;  %2516 = vmatpush3.bf16.msra.mxu1 %v2750_v21  ;;  %v2751_v22 = vld [vmem:[#allocation10 + $0x78] sm:$0xff]   ;;  %v542_v23 = vld [vmem:[%s3514_s5] sm:$0x3] }
 0x1a2   :  { %v470_v28 = vmax.f32 %v423_v24, 0.0  ;;  %v427_v30 = vpop.f32.mrb[3].mxu0  ;;  %v468_v45 = vpop.f32.mrb[3].mxu1  ;;  %v472_v14 = vmax.f32 %v464_v11, 0.0  ;;  %2517 = vmatprep.subr.bf16.mxu1 %v2751_v22  ;;  %v547_v24 = vrot.slane %v542_v23, %v3423_v18  ;;  %v551_v25 = vrot.slane %v542_v23, %v3431_v20  ;;  %v2758_v40 = vld [vmem:[#allocation13 + $0x14] ss:$8 sps:$4 sm:$0xff]  }
 0x1a3   :  { %v471_v31 = vmax.f32 %v425_v26, 0.0  ;;  %v473_v47 = vmax.f32 %v466_v42, 0.0  ;;  %v2756_v41 = vld [vmem:[#allocation13 + $0x10] ss:$8 sps:$4 sm:$0xff]   ;;  %v2761_v42 = vld [vmem:[#allocation13 + $0x24] ss:$8 sps:$4 sm:$0xff]  }
 0x1a4   :  { %v474_v35 = vpack.c.bf16 %v470_v28, %v470_v28  ;;  %v476_v15 = vpack.c.bf16 %v472_v14, %v472_v14  ;;  %v2759_v43 = vld [vmem:[#allocation13 + $0x20] ss:$8 sps:$4 sm:$0xff]   ;;  %v2762_v45 = vld [vmem:[#allocation13 + $0x30] ss:$8 sps:$4 sm:$0xff]   ;;  %v2818_v21 = vld [vmem:[#allocation14 + $0x8c] ss:$16 sps:$4 sm:$0xff]  }
 0x1a5   :  { %v475_v33 = vpack.c.bf16 %v471_v31, %v471_v31  ;;  %v477_v48 = vpack.c.bf16 %v473_v47, %v473_v47  ;;  %2518 = vmatpush3.bf16.msra.mxu1 %v2752_v19  ;;  %v2765_v47 = vld [vmem:[#allocation13 + $0x40] ss:$8 sps:$4 sm:$0xff]   ;;  %v2824_v19 = vld [vmem:[#allocation14 + $0xac] ss:$16 sps:$4 sm:$0xff]  }
 0x1a6   :  { %v2798_v11 = vld [vmem:[#allocation14 + $0x28] ss:$16 sps:$4 sm:$0xff]  }
 0x1a7   :  { %906 = vmatprep.mubr.bf16.mxu0 %v475_v33  ;;  %v2804_v14 = vld [vmem:[#allocation14 + $0x48] ss:$16 sps:$4 sm:$0xff]  }
 0x1a8   :  { %907 = vmatmul.mubr.bf16.vlgmr.msra.gmra.mrb[4].mxu0 %v474_v35  ;;  %v2816_v22 = vld [vmem:[#allocation14 + $0x88] ss:$16 sps:$4 sm:$0xff]  }
 0x1a9   :  { %916 = vmatpush1.bf16.msra.mxu0 %v2689_v34  ;;  %947 = vmatprep.mubr.bf16.mxu0 %v477_v48  ;;  %v2770_v48 = vld [vmem:[#allocation13 + $0x54] ss:$8 sps:$4 sm:$0xff]   ;;  %v2822_v23 = vld [vmem:[#allocation14 + $0xa8] ss:$16 sps:$4 sm:$0xff]  }
 0x1aa   :  { %917 = vmatprep.subr.bf16.mxu0 %v2694_v36 }
 0x1ad   :  { %918 = vmatpush1.bf16.msra.mxu0 %v2692_v38  ;;  %v2753_v38 = vld [vmem:[#allocation13] ss:$8 sps:$4 sm:$0xff]  }
 0x1ae   :  { %919 = vmatprep.subr.bf16.mxu0 %v2697_v39  ;;  %v2755_v39 = vld [vmem:[#allocation13 + $0x4] ss:$8 sps:$4 sm:$0xff]  }
 0x1af   :  { %1251 = vmatprep.subr.bf16.mxu1 %v2755_v39  ;;  %v2864_v39 = vld [vmem:[#allocation14 + $0x188] ss:$16 sps:$4 sm:$0xff]  }
 0x1b1   :  { %920 = vmatpush1.bf16.msra.mxu0 %v2695_v44  ;;  %v2764_v44 = vld [vmem:[#allocation13 + $0x34] ss:$8 sps:$4 sm:$0xff]  }
 0x1b2   :  { %921 = vmatprep.subr.bf16.mxu0 %v2700_v46  ;;  %v2767_v46 = vld [vmem:[#allocation13 + $0x44] ss:$8 sps:$4 sm:$0xff]  }
 0x1b5   :  { %922 = vmatpush1.bf16.msra.mxu0 %v2698_v49  ;;  %v2768_v49 = vld [vmem:[#allocation13 + $0x50] ss:$8 sps:$4 sm:$0xff]  }
 0x1b6   :  { %923 = vmatprep.subr.bf16.mxu0 %v2703_v50  ;;  %v2773_v50 = vld [vmem:[#allocation13 + $0x64] ss:$8 sps:$4 sm:$0xff]  }
 0x1b9   :  { %924 = vmatpush1.bf16.msra.mxu0 %v2701_v51  ;;  %v2771_v51 = vld [vmem:[#allocation13 + $0x60] ss:$8 sps:$4 sm:$0xff]  }
 0x1ba   :  { %925 = vmatprep.subr.bf16.mxu0 %v2706_v52  ;;  %v2776_v52 = vld [vmem:[#allocation13 + $0x74] ss:$8 sps:$4 sm:$0xff]  }
 0x1bd   :  { %926 = vmatpush1.bf16.msra.mxu0 %v2704_v53  ;;  %v2774_v53 = vld [vmem:[#allocation13 + $0x70] ss:$8 sps:$4 sm:$0xff]  }
 0x1be   :  { %927 = vmatprep.subr.bf16.mxu0 %v2709_v54  ;;  %v2779_v54 = vld [vmem:[#allocation11 + $0x4] ss:$8 sps:$4 sm:$0xff]  }
 0x1c1   :  { %928 = vmatpush1.bf16.msra.mxu0 %v2707_v55  ;;  %v2777_v55 = vld [vmem:[#allocation11] ss:$8 sps:$4 sm:$0xff]  }
 0x1c2   :  { %929 = vmatprep.subr.bf16.mxu0 %v2712_v56  ;;  %v2782_v56 = vld [vmem:[#allocation11 + $0x14] ss:$8 sps:$4 sm:$0xff]  }
 0x1c5   :  { %930 = vmatpush1.bf16.msra.mxu0 %v2710_v57  ;;  %v2780_v57 = vld [vmem:[#allocation11 + $0x10] ss:$8 sps:$4 sm:$0xff]  }
 0x1c6   :  { %931 = vmatprep.subr.bf16.mxu0 %v2715_v58  ;;  %v2785_v58 = vld [vmem:[#allocation11 + $0x24] ss:$8 sps:$4 sm:$0xff]  }
 0x1c9   :  { %932 = vmatpush1.bf16.msra.mxu0 %v2713_v59  ;;  %v2783_v59 = vld [vmem:[#allocation11 + $0x20] ss:$8 sps:$4 sm:$0xff]  }
 0x1ca   :  { %933 = vmatprep.subr.bf16.mxu0 %v2718_v60 }
 0x1cd   :  { %934 = vmatpush1.bf16.msra.mxu0 %v2716_v61  ;;  %v2364_v61 = vld [vmem:[%s3516_s7] ss:$0 sm:$0xff] }
 0x1ce   :  { %935 = vmatprep.subr.bf16.mxu0 %v2721_v62 }
 0x1d1   :  { %936 = vmatpush1.bf16.msra.mxu0 %v2719_v63 }
 0x1d2   :  { %937 = vmatprep.subr.bf16.mxu0 %v2724_v1 }
 0x1d5   :  { %938 = vmatpush1.bf16.msra.mxu0 %v2722_v2 }
 0x1d6   :  { %939 = vmatprep.subr.bf16.mxu0 %v2727_v3 }
 0x1d9   :  { %940 = vmatpush1.bf16.msra.mxu0 %v2725_v4  ;;  %v2788_v4 = vld [vmem:[#allocation11 + $0x34] ss:$8 sps:$4 sm:$0xff]  }
 0x1da   :  { %941 = vmatprep.subr.bf16.mxu0 %v2730_v6  ;;  %v2786_v6 = vld [vmem:[#allocation11 + $0x30] ss:$8 sps:$4 sm:$0xff]  }
 0x1dd   :  { %942 = vmatpush1.bf16.msra.mxu0 %v2728_v7  ;;  %v2791_v7 = vld [vmem:[#allocation14 + $0x4] ss:$16 sps:$4 sm:$0xff]  }
 0x1de   :  { %943 = vmatprep.subr.bf16.mxu0 %v2733_v9  ;;  %v2794_v9 = vld [vmem:[#allocation14 + $0xc] ss:$16 sps:$4 sm:$0xff]  }
 0x1e1   :  { %944 = vmatpush1.bf16.msra.mxu0 %v2731_v10  ;;  %v2800_v10 = vld [vmem:[#allocation14 + $0x2c] ss:$16 sps:$4 sm:$0xff]  }
 0x1e2   :  { %945 = vmatprep.subr.bf16.mxu0 %v2736_v12 }
 0x1e5   :  { %946 = vmatpush1.bf16.msra.mxu0 %v2734_v13  ;;  %v2806_v13 = vld [vmem:[#allocation14 + $0x4c] ss:$16 sps:$4 sm:$0xff]  }
 0x1e6   :  { %1842 = vmatprep.subr.bf16.mxu0 %v2794_v9  ;;  %v2855_v9 = vld [vmem:[#allocation14 + $0x160] ss:$16 sps:$4 sm:$0xff]  }
 0x1e8   :  { %948 = vmatmul.mubr.bf16.vlgmr.msra.gmra.mrb[4].mxu0 %v476_v15  ;;  %v2812_v15 = vld [vmem:[#allocation14 + $0x6c] ss:$16 sps:$4 sm:$0xff]  }
 0x1e9   :  { %1843 = vmatpush1.bf16.msra.mxu0 %v2792_v8  ;;  %v2857_v8 = vld [vmem:[#allocation14 + $0x164] ss:$16 sps:$4 sm:$0xff]  }
 0x1ea   :  { %1844 = vmatprep.subr.bf16.mxu0 %v2800_v10  ;;  %v2863_v10 = vld [vmem:[#allocation14 + $0x184] ss:$16 sps:$4 sm:$0xff]  }
 0x1ed   :  { %1845 = vmatpush1.bf16.msra.mxu0 %v2798_v11  ;;  %v2861_v11 = vld [vmem:[#allocation14 + $0x180] ss:$16 sps:$4 sm:$0xff]  }
 0x1ee   :  { %1846 = vmatprep.subr.bf16.mxu0 %v2806_v13  ;;  %v2867_v13 = vld [vmem:[#allocation14 + $0x1a0] ss:$16 sps:$4 sm:$0xff]  }
 0x1f1   :  { %1847 = vmatpush1.bf16.msra.mxu0 %v2804_v14  ;;  %v2875_v14 = vld [vmem:[#allocation14 + $0x1c4] ss:$16 sps:$4 sm:$0xff]  }
 0x1f2   :  { %1848 = vmatprep.subr.bf16.mxu0 %v2812_v15  ;;  %v2878_v15 = vld [vmem:[#allocation14 + $0x1cc] ss:$16 sps:$4 sm:$0xff]  }
 0x1f5   :  { %1849 = vmatpush1.bf16.msra.mxu0 %v2810_v16  ;;  %v2873_v16 = vld [vmem:[#allocation14 + $0x1c0] ss:$16 sps:$4 sm:$0xff]  }
 0x1f6   :  { %1850 = vmatprep.subr.bf16.mxu0 %v2818_v21  ;;  %v2876_v21 = vld [vmem:[#allocation14 + $0x1c8] ss:$16 sps:$4 sm:$0xff]  }
 0x1f9   :  { %1851 = vmatpush1.bf16.msra.mxu0 %v2816_v22  ;;  %v2881_v22 = vld [vmem:[#allocation14 + $0x1e4] ss:$16 sps:$4 sm:$0xff]  }
 0x1fa   :  { %1852 = vmatprep.subr.bf16.mxu0 %v2824_v19  ;;  %v2884_v19 = vld [vmem:[#allocation14 + $0x1ec] ss:$16 sps:$4 sm:$0xff]  }
 0x1fd   :  { %1853 = vmatpush1.bf16.msra.mxu0 %v2822_v23  ;;  %v2879_v23 = vld [vmem:[#allocation14 + $0x1e0] ss:$16 sps:$4 sm:$0xff]  }
 0x2bb   :  { %v949_v26 = vpop.f32.mrb[4].mxu0 }
 0x2bc   :  { %v2569_v27 = vadd.f32 %v949_v26, %v547_v24  ;;  %v951_v28 = vpop.f32.mrb[5].mxu0  ;;  %v2830_v24 = vld [vmem:[#allocation14 + $0xcc] ss:$16 sps:$4 sm:$0xff]  }
 0x2bd   :  { %v2570_v30 = vadd.f32 %v951_v28, %v551_v25  ;;  %v953_v31 = vpop.f32.mrb[6].mxu0  ;;  %v2828_v25 = vld [vmem:[#allocation14 + $0xc8] ss:$16 sps:$4 sm:$0xff]   ;;  %1854 = vmatprep.subr.bf16.mxu0 %v2830_v24  ;;  %v2836_v26 = vld [vmem:[#allocation14 + $0xec] ss:$16 sps:$4 sm:$0xff]  }
 0x2be   :  { %v956_v33 = vmax.f32 %v2569_v27, 0.0  ;;  %v954_v34 = vpop.f32.mrb[7].mxu0  ;;  %1855 = vmatpush1.bf16.msra.mxu0 %v2828_v25  ;;  %v2834_v27 = vld [vmem:[#allocation14 + $0xe8] ss:$16 sps:$4 sm:$0xff]   ;;  %v2842_v28 = vld [vmem:[#allocation14 + $0x10c] ss:$16 sps:$4 sm:$0xff]  }
 0x2bf   :  { %v957_v35 = vmax.f32 %v2570_v30, 0.0  ;;  %1856 = vmatprep.subr.bf16.mxu0 %v2836_v26  ;;  %v2840_v30 = vld [vmem:[#allocation14 + $0x108] ss:$16 sps:$4 sm:$0xff]   ;;  %v2848_v31 = vld [vmem:[#allocation14 + $0x12c] ss:$16 sps:$4 sm:$0xff]   ;;  %v2885_v25 = vld [vmem:[#allocation16 + $0x40] sm:$0xff]  }
 0x2c0   :  { %v958_v37 = vpack.c.bf16 %v956_v33, %v956_v33  ;;  %v2846_v33 = vld [vmem:[#allocation14 + $0x128] ss:$16 sps:$4 sm:$0xff]   ;;  %v2854_v34 = vld [vmem:[#allocation14 + $0x14c] ss:$16 sps:$4 sm:$0xff]   ;;  %v1377_v26 = vld [vmem:[%s3519_s10] sm:$0x3] }
 0x2c1   :  { %v959_v36 = vpack.c.bf16 %v957_v35, %v957_v35  ;;  %v2852_v35 = vld [vmem:[#allocation14 + $0x148] ss:$16 sps:$4 sm:$0xff]  }
 0x2c2   :  { %1857 = vmatpush1.bf16.msra.mxu0 %v2834_v27  ;;  %v2882_v24 = vld [vmem:[#allocation14 + $0x1e8] ss:$16 sps:$4 sm:$0xff]   ;;  %v1382_v27 = vrot.slane %v1377_v26, %v3423_v18 }
 0x2c3   :  { %1127 = vmatprep.mubr.bf16.mxu1 %v959_v36  ;;  %1858 = vmatprep.subr.bf16.mxu0 %v2842_v28  ;;  %v2860_v36 = vld [vmem:[#allocation14 + $0x16c] ss:$16 sps:$4 sm:$0xff]  }
 0x2c4   :  { %1128 = vmatmul.mubr.bf16.vlgmr.msra.gmra.mrb[4].mxu1 %v958_v37  ;;  %v2858_v37 = vld [vmem:[#allocation14 + $0x168] ss:$16 sps:$4 sm:$0xff]  }
 0x2c5   :  { %1283 = vmatprep.mubr.bf16.mxu1 %v3190_v0  ;;  %1252 = vmatpush1.bf16.msra.mxu1 %v2753_v38  ;;  %v2866_v38 = vld [vmem:[#allocation14 + $0x18c] ss:$16 sps:$4 sm:$0xff]  }
 0x2c6   :  { %1253 = vmatprep.subr.bf16.mxu1 %v2758_v40  ;;  %1859 = vmatpush1.bf16.msra.mxu0 %v2840_v30  ;;  %v2872_v40 = vld [vmem:[#allocation14 + $0x1ac] ss:$16 sps:$4 sm:$0xff]   ;;  %v1386_v30 = vrot.slane %v1377_v26, %v3431_v20 }
 0x2c7   :  { %1860 = vmatprep.subr.bf16.mxu0 %v2848_v31  ;;  %v2912_v26 = vld [vmem:[#allocation16 + $0xa8] sm:$0xff]  }
 0x2c9   :  { %1254 = vmatpush1.bf16.msra.mxu1 %v2756_v41  ;;  %v2870_v41 = vld [vmem:[#allocation14 + $0x1a8] ss:$16 sps:$4 sm:$0xff]  }
 0x2ca   :  { %1255 = vmatprep.subr.bf16.mxu1 %v2761_v42  ;;  %1861 = vmatpush1.bf16.msra.mxu0 %v2846_v33  ;;  %v1136_v42 = vld [vmem:[#allocation5] sm:$0xff] }
 0x2cb   :  { %1862 = vmatprep.subr.bf16.mxu0 %v2854_v34 }
 0x2cd   :  { %1256 = vmatpush1.bf16.msra.mxu1 %v2759_v43 }
 0x2ce   :  { %1257 = vmatprep.subr.bf16.mxu1 %v2764_v44  ;;  %1863 = vmatpush1.bf16.msra.mxu0 %v2852_v35 }
 0x2cf   :  { %1864 = vmatprep.subr.bf16.mxu0 %v2860_v36 }
 0x2d1   :  { %1258 = vmatpush1.bf16.msra.mxu1 %v2762_v45 }
 0x2d2   :  { %1259 = vmatprep.subr.bf16.mxu1 %v2767_v46  ;;  %1865 = vmatpush1.bf16.msra.mxu0 %v2858_v37 }
 0x2d3   :  { %1866 = vmatprep.subr.bf16.mxu0 %v2866_v38 }
 0x2d5   :  { %1260 = vmatpush1.bf16.msra.mxu1 %v2765_v47  ;;  %v2789_v47 = vld [vmem:[#allocation14] ss:$16 sps:$4 sm:$0xff]  }
 0x2d6   :  { %1261 = vmatprep.subr.bf16.mxu1 %v2770_v48  ;;  %1867 = vmatpush1.bf16.msra.mxu0 %v2864_v39 }
 0x2d7   :  { %1868 = vmatprep.subr.bf16.mxu0 %v2872_v40 }
 0x2d9   :  { %1262 = vmatpush1.bf16.msra.mxu1 %v2768_v49 }
 0x2da   :  { %1263 = vmatprep.subr.bf16.mxu1 %v2773_v50  ;;  %1869 = vmatpush1.bf16.msra.mxu0 %v2870_v41  ;;  %v2797_v50 = vld [vmem:[#allocation14 + $0x24] ss:$16 sps:$4 sm:$0xff]  }
 0x2db   :  { %1870 = vmatprep.subr.bf16.mxu0 %v2878_v15 }
 0x2dd   :  { %1264 = vmatpush1.bf16.msra.mxu1 %v2771_v51 }
 0x2de   :  { %1265 = vmatprep.subr.bf16.mxu1 %v2776_v52  ;;  %1871 = vmatpush1.bf16.msra.mxu0 %v2876_v21  ;;  %v2906_v21 = vld [vmem:[#allocation16 + $0x90] sm:$0xff]  }
 0x2df   :  { %1872 = vmatprep.subr.bf16.mxu0 %v2884_v19  ;;  %v2908_v19 = vld [vmem:[#allocation16 + $0x98] sm:$0xff]  }
 0x2e1   :  { %1266 = vmatpush1.bf16.msra.mxu1 %v2774_v53  ;;  %v2795_v53 = vld [vmem:[#allocation14 + $0x20] ss:$16 sps:$4 sm:$0xff]  }
 0x2e2   :  { %1336 = vmatprep.subr.bf16.mxu1 %v2779_v54  ;;  %v2803_v54 = vld [vmem:[#allocation14 + $0x44] ss:$16 sps:$4 sm:$0xff]   ;;  %1873 = vmatpush1.bf16.msra.mxu0 %v2882_v24 }
 0x2e3   :  { %v2910_v24 = vld [vmem:[#allocation16 + $0xa0] sm:$0xff]  }
 0x2e4   :  { %1284 = vmatmul.mubr.bf16.vlgmr.msra.gmra.mrb[8].mxu1 %v3416_v29 }
 0x2e5   :  { %1337 = vmatpush1.bf16.msra.mxu1 %v2777_v55  ;;  %1368 = vmatprep.mubr.bf16.mxu1 %v3190_v0  ;;  %v2801_v55 = vld [vmem:[#allocation14 + $0x40] ss:$16 sps:$4 sm:$0xff]  }
 0x2e6   :  { %1338 = vmatprep.subr.bf16.mxu1 %v2782_v56  ;;  %v2809_v56 = vld [vmem:[#allocation14 + $0x64] ss:$16 sps:$4 sm:$0xff]  }
 0x2e9   :  { %1339 = vmatpush1.bf16.msra.mxu1 %v2780_v57  ;;  %v2807_v57 = vld [vmem:[#allocation14 + $0x60] ss:$16 sps:$4 sm:$0xff]  }
 0x2ea   :  { %1340 = vmatprep.subr.bf16.mxu1 %v2785_v58  ;;  %v2815_v58 = vld [vmem:[#allocation14 + $0x84] ss:$16 sps:$4 sm:$0xff]  }
 0x2ed   :  { %1341 = vmatpush1.bf16.msra.mxu1 %v2783_v59  ;;  %v2813_v59 = vld [vmem:[#allocation14 + $0x80] ss:$16 sps:$4 sm:$0xff]  }
 0x2ee   :  { %1342 = vmatprep.subr.bf16.mxu1 %v2788_v4  ;;  %v2843_v4 = vld [vmem:[#allocation14 + $0x120] ss:$16 sps:$4 sm:$0xff]  }
 0x2f1   :  { %1343 = vmatpush1.bf16.msra.mxu1 %v2786_v6  ;;  %v2851_v6 = vld [vmem:[#allocation14 + $0x144] ss:$16 sps:$4 sm:$0xff]  }
 0x2f2   :  { %1801 = vmatprep.subr.bf16.mxu1 %v2791_v7  ;;  %v2849_v7 = vld [vmem:[#allocation14 + $0x140] ss:$16 sps:$4 sm:$0xff]  }
 0x397   :  { %v2519_v60 = vpop.f32.mrb[4].mxu1 }
 0x398   :  { %v2520_v62 = vpop.f32.mrb[5].mxu1 }
 0x399   :  { %v2521_v63 = vadd.f32 %v2520_v62, %v2519_v60  ;;  %v2522_v1 = vpop.f32.mrb[6].mxu1  ;;  %v2821_v60 = vld [vmem:[#allocation14 + $0xa4] ss:$16 sps:$4 sm:$0xff]  }
 0x39a   :  { %v2523_v2 = vpop.f32.mrb[7].mxu1  ;;  %v2827_v62 = vld [vmem:[#allocation14 + $0xc4] ss:$16 sps:$4 sm:$0xff]  }
 0x39b   :  { %v3456_v29 = vadd.f32 %v2521_v63, %v2364_v61  ;;  %v2819_v61 = vld [vmem:[#allocation14 + $0xa0] ss:$16 sps:$4 sm:$0xff]   ;;  %v2833_v1 = vld [vmem:[#allocation14 + $0xe4] ss:$16 sps:$4 sm:$0xff]  }
 0x39c   :  { %v2825_v63 = vld [vmem:[#allocation14 + $0xc0] ss:$16 sps:$4 sm:$0xff]  }
 0x39d   :  { %1135 = vst [vmem:[#allocation18] sm:$0xff] %v3456_v29  ;;  %v1137_v0 = vmul.f32 0.5, %v3456_v29  ;;  %v2831_v2 = vld [vmem:[#allocation14 + $0xe0] ss:$16 sps:$4 sm:$0xff]  }
 0x39f   :  { %v1138_v3 = vmul.f32 1.442695, %v1137_v0  ;;  %v2837_v0 = vld [vmem:[#allocation14 + $0x100] ss:$16 sps:$4 sm:$0xff]  }
 0x3a1   :  { %2917 = vpow2.f32 %v1138_v3  ;;  %v2845_v3 = vld [vmem:[#allocation14 + $0x124] ss:$16 sps:$4 sm:$0xff]  }
 0x3ab   :  { %v2918_v12 = vpop.eup %2917 }
 0x3ac   :  { %1141 = vrot.lane.b32.xlu0 %v2918_v12, %s3186_s2  ;;  %v2869_v12 = vld [vmem:[#allocation14 + $0x1a4] ss:$16 sps:$4 sm:$0xff]  }
 0x3b7   :  { %v3462_v46 = vpop.f32.mrb[8].mxu1 }
 0x3b8   :  { %v3464_v48 = vpop.f32.mrb[9].mxu1 }
 0x3b9   :  { %v1289_v51 = vpop.f32.mrb[10].mxu1 }
 0x3ba   :  { %v1290_v52 = vpop.f32.mrb[11].mxu1  ;;  %v2894_v51 = vld [vmem:[#allocation16 + $0x20] sm:$0xff]  }
 0x3bb   :  { %v2895_v52 = vld [vmem:[#allocation16 + $0x68] sm:$0xff]  }
 0x41e   :  { %v1142_v43 = vpop.permute.xlu0 %1141 }
 0x41f   :  { %v1144_v44 = vmul.f32 %v1142_v43, %v1136_v42  ;;  %v2886_v42 = vld [vmem:[#allocation16] sm:$0xff]  }
 0x421   :  { %v1145_v45 = vadd.f32 %v1144_v44, %v3456_v29  ;;  %v2839_v29 = vld [vmem:[#allocation14 + $0x104] ss:$16 sps:$4 sm:$0xff]   ;;  %v2887_v44 = vld [vmem:[#allocation16 + $0x48] sm:$0xff]  }
 0x423   :  { %v1146_v49 = vpack.c.bf16 %v1145_v45, %v1145_v45  ;;  %v2888_v45 = vld [vmem:[#allocation16 + $0x8] sm:$0xff]  }
 0x425   :  { %2405 = vmatmul.mubr.msk.bf16.vlgmr.msra.gmra.mrb[12].mxu1 %vm1332_vm0, %v1146_v49  ;;  %v2892_v49 = vld [vmem:[#allocation16 + $0x18] sm:$0xff]  }
 0x426   :  { %1802 = vmatpush1.bf16.msra.mxu1 %v2789_v47  ;;  %v2890_v47 = vld [vmem:[#allocation16 + $0x10] sm:$0xff]  }
 0x427   :  { %1803 = vmatprep.subr.bf16.mxu1 %v2797_v50  ;;  %v2893_v50 = vld [vmem:[#allocation16 + $0x60] sm:$0xff]  }
 0x42a   :  { %1804 = vmatpush1.bf16.msra.mxu1 %v2795_v53  ;;  %v2896_v53 = vld [vmem:[#allocation16 + $0x28] sm:$0xff]  }
 0x42b   :  { %1805 = vmatprep.subr.bf16.mxu1 %v2803_v54  ;;  %v2897_v54 = vld [vmem:[#allocation16 + $0x70] sm:$0xff]  }
 0x42e   :  { %1806 = vmatpush1.bf16.msra.mxu1 %v2801_v55  ;;  %v2898_v55 = vld [vmem:[#allocation16 + $0x30] sm:$0xff]  }
 0x42f   :  { %1807 = vmatprep.subr.bf16.mxu1 %v2809_v56  ;;  %v2899_v56 = vld [vmem:[#allocation16 + $0x78] sm:$0xff]  }
 0x432   :  { %1808 = vmatpush1.bf16.msra.mxu1 %v2807_v57  ;;  %v2900_v57 = vld [vmem:[#allocation16 + $0x38] sm:$0xff]  }
 0x433   :  { %1809 = vmatprep.subr.bf16.mxu1 %v2815_v58  ;;  %v2901_v58 = vld [vmem:[#allocation16 + $0xc0] sm:$0xff]  }
 0x436   :  { %1810 = vmatpush1.bf16.msra.mxu1 %v2813_v59  ;;  %v1459_v59 = vld [vmem:[%s3521_s12] sm:$0xf]  ;;  %s3191_s12 = smov [#allocation18]  }
 0x437   :  { %1811 = vmatprep.subr.bf16.mxu1 %v2821_v60  ;;  %v1464_v60 = vrot.slane %v1459_v59, %v3423_v18  ;;  %s2251_s24 = sshll.u32 %s3191_s12, 4  ;;  %s2252_s24 = int_to_ptr.vmem [resolvable:$true] %s2251_s24 }
 0x438   :  { %s3117_s0 = scalar_lea.vmem %s2252_s24, 128  ;;  %p3122_p3 = scmp.lt.s32.totalorder %s2252_s24, %s2252_s24 }
 0x439   :  { %p3118_p2 = scmp.ne.s32.totalorder %s2252_s24, %s3117_s0  ;;  %p3123_p4 = scmp.lt.s32.totalorder %s3117_s0, %s3117_s0 }
 0x43a   :  { %1812 = vmatpush1.bf16.msra.mxu1 %v2819_v61  ;;  %v1468_v61 = vrot.slane %v1459_v59, %v3431_v20 }
 0x43b   :  { %1813 = vmatprep.subr.bf16.mxu1 %v2827_v62  ;;  %v1476_v62 = vrot.slane %v1459_v59, %v222_v32  ;;  %v2904_v32 = vld [vmem:[#allocation16 + $0x88] sm:$0xff]   ;;  %p3124_p5 = por %p3123_p4, %p3122_p3 }
 0x43d   :  { %p3125_p6 = pnand %p3124_p5, %p3118_p2 }
 0x43e   :  { %1814 = vmatpush1.bf16.msra.mxu1 %v2825_v63 }
 0x43f   :  { %1815 = vmatprep.subr.bf16.mxu1 %v2833_v1 }
 0x442   :  { %1816 = vmatpush1.bf16.msra.mxu1 %v2831_v2 }
 0x443   :  { %1817 = vmatprep.subr.bf16.mxu1 %v2839_v29 }
 0x446   :  { %1818 = vmatpush1.bf16.msra.mxu1 %v2837_v0 }
 0x447   :  { %1819 = vmatprep.subr.bf16.mxu1 %v2845_v3 }
 0x44a   :  { %1820 = vmatpush1.bf16.msra.mxu1 %v2843_v4 }
 0x44b   :  { %1821 = vmatprep.subr.bf16.mxu1 %v2851_v6 }
 0x44e   :  { %1822 = vmatpush1.bf16.msra.mxu1 %v2849_v7 }
 0x44f   :  { %1823 = vmatprep.subr.bf16.mxu1 %v2857_v8 }
 0x452   :  { %1824 = vmatpush1.bf16.msra.mxu1 %v2855_v9 }
 0x453   :  { %1825 = vmatprep.subr.bf16.mxu1 %v2863_v10 }
 0x456   :  { %1826 = vmatpush1.bf16.msra.mxu1 %v2861_v11 }
 0x457   :  { %1827 = vmatprep.subr.bf16.mxu1 %v2869_v12 }
 0x45a   :  { %1828 = vmatpush1.bf16.msra.mxu1 %v2867_v13  ;;  %v2902_v13 = vld [vmem:[#allocation16 + $0x80] sm:$0xff]  }
 0x45b   :  { %1829 = vmatprep.subr.bf16.mxu1 %v2875_v14  ;;  %v2903_v14 = vld [vmem:[#allocation16 + $0xc8] sm:$0xff]  }
 0x45e   :  { %1830 = vmatpush1.bf16.msra.mxu1 %v2873_v16  ;;  %v2905_v16 = vld [vmem:[#allocation16 + $0xd0] sm:$0xff]  }
 0x45f   :  { %1831 = vmatprep.subr.bf16.mxu1 %v2881_v22  ;;  %v2907_v22 = vld [vmem:[#allocation16 + $0xd8] sm:$0xff]  }
 0x462   :  { %1832 = vmatpush1.bf16.msra.mxu1 %v2879_v23  ;;  %v2909_v23 = vld [vmem:[#allocation16 + $0xe0] sm:$0xff]  }
 0x463   :  { %2525 = vmatprep.subr.bf16.mxu1 %v2885_v25  ;;  %v2911_v25 = vld [vmem:[#allocation16 + $0xe8] sm:$0xff]  }
 0x4f8   :  { %v1370_v28 = vpop.f32.mrb[12].mxu1 }
 0x4f9   :  { %v1371_v31 = vadd.f32 %v1370_v28, %v3462_v46  ;;  %v1372_v33 = vpop.f32.mrb[13].mxu1  ;;  %v2889_v46 = vld [vmem:[#allocation16 + $0x50] sm:$0xff]  }
 0x4fa   :  { %v1373_v34 = vadd.f32 %v1372_v33, %v3464_v48  ;;  %v1374_v35 = vpop.f32.mrb[14].mxu1  ;;  %v2891_v48 = vld [vmem:[#allocation16 + $0x58] sm:$0xff]   ;;  %v2913_v28 = vld [vmem:[#allocation16 + $0xf0] sm:$0xff]  }
 0x4fb   :  { %v1389_v36 = vadd.f32 %v1382_v27, %v1371_v31  ;;  %v1375_v37 = vpop.f32.mrb[15].mxu1  ;;  %v1472_v27 = vrot.slane %v1459_v59, %v218_v5  ;;  %v2915_v33 = vld [vmem:[#allocation16 + $0xf8] sm:$0xff]  }
 0x4fc   :  { %v1390_v38 = vadd.f32 %v1386_v30, %v1373_v34  ;;  %v2914_v30 = vld [vmem:[#allocation16 + $0xb0] sm:$0xff]   ;;  %v2916_v34 = vld [vmem:[#allocation16 + $0xb8] sm:$0xff]  }
 0x4fd   :  { %v1391_v39 = vmax.f32 %v1389_v36, 0.0 }
 0x4fe   :  { %v1392_v40 = vmax.f32 %v1390_v38, 0.0 }
 0x4ff   :  { %v1393_v43 = vpack.c.bf16 %v1391_v39, %v1391_v39 }
 0x500   :  { %v1394_v41 = vpack.c.bf16 %v1392_v40, %v1392_v40 }
 0x502   :  { %1833 = vmatprep.mubr.bf16.mxu1 %v1394_v41  ;;  %1874 = vmatprep.mubr.bf16.mxu0 %v1394_v41 }
 0x503   :  { %1834 = vmatmul.mubr.bf16.vlgmr.msra.gmra.mrb[16].mxu1 %v1393_v43  ;;  %1875 = vmatmul.mubr.bf16.vlgmr.msra.gmra.mrb[8].mxu0 %v1393_v43 }
 0x504   :  { %2526 = vmatpush3.bf16.msra.mxu1 %v2886_v42 }
 0x505   :  { %2527 = vmatprep.subr.bf16.mxu1 %v2887_v44 }
 0x508   :  { %2528 = vmatpush3.bf16.msra.mxu1 %v2888_v45 }
 0x509   :  { %2529 = vmatprep.subr.bf16.mxu1 %v2889_v46 }
 0x50c   :  { %2530 = vmatpush3.bf16.msra.mxu1 %v2890_v47 }
 0x50d   :  { %2531 = vmatprep.subr.bf16.mxu1 %v2891_v48 }
 0x510   :  { %2532 = vmatpush3.bf16.msra.mxu1 %v2892_v49 }
 0x511   :  { %2533 = vmatprep.subr.bf16.mxu1 %v2893_v50 }
 0x514   :  { %2534 = vmatpush3.bf16.msra.mxu1 %v2894_v51 }
 0x515   :  { %2535 = vmatprep.subr.bf16.mxu1 %v2895_v52 }
 0x518   :  { %2536 = vmatpush3.bf16.msra.mxu1 %v2896_v53 }
 0x519   :  { %2537 = vmatprep.subr.bf16.mxu1 %v2897_v54 }
 0x51c   :  { %2538 = vmatpush3.bf16.msra.mxu1 %v2898_v55 }
 0x51d   :  { %2539 = vmatprep.subr.bf16.mxu1 %v2899_v56 }
 0x520   :  { %2540 = vmatpush3.bf16.msra.mxu1 %v2900_v57 }
 0x521   :  { %2547 = vmatprep.subr.bf16.mxu1 %v2901_v58 }
 0x5d6   :  { %v1835_v63 = vpop.f32.mrb[16].mxu1  ;;  %v1876_v1 = vpop.f32.mrb[8].mxu0 }
 0x5d7   :  { %v1836_v2 = vadd.f32 %v1835_v63, %v1464_v60  ;;  %v1837_v29 = vpop.f32.mrb[17].mxu1  ;;  %v1878_v0 = vpop.f32.mrb[9].mxu0  ;;  %v1877_v31 = vadd.f32 %v1876_v1, %v1472_v27 }
 0x5d8   :  { %v1838_v3 = vadd.f32 %v1837_v29, %v1468_v61  ;;  %v1879_v4 = vadd.f32 %v1878_v0, %v1476_v62  ;;  %v1839_v6 = vpop.f32.mrb[18].mxu1  ;;  %v1880_v7 = vpop.f32.mrb[10].mxu0 }
 0x5d9   :  { %v1883_v8 = vmax.f32 %v1836_v2, 0.0  ;;  %v1840_v9 = vpop.f32.mrb[19].mxu1  ;;  %v1881_v10 = vpop.f32.mrb[11].mxu0  ;;  %v1885_v35 = vmax.f32 %v1877_v31, 0.0 }
 0x5da   :  { %v1884_v11 = vmax.f32 %v1838_v3, 0.0  ;;  %v1886_v12 = vmax.f32 %v1879_v4, 0.0 }
 0x5db   :  { %v1887_v20 = vpack.c.bf16 %v1883_v8, %v1883_v8  ;;  %v1889_v36 = vpack.c.bf16 %v1885_v35, %v1885_v35 }
 0x5dc   :  { %v1888_v18 = vpack.c.bf16 %v1884_v11, %v1884_v11  ;;  %v1890_v15 = vpack.c.bf16 %v1886_v12, %v1886_v12 }
 0x5de   :  { %2186 = vmatprep.mubr.bf16.mxu1 %v1888_v18 }
 0x5df   :  { %2187 = vmatmul.mubr.bf16.vlgmr.msra.gmra.mrb[20].mxu1 %v1887_v20 }
 0x5e0   :  { %2548 = vmatpush3.bf16.msra.mxu1 %v2902_v13  ;;  %2226 = vmatprep.mubr.bf16.mxu1 %v1890_v15 }
 0x5e1   :  { %2549 = vmatprep.subr.bf16.mxu1 %v2903_v14 }
 0x5e4   :  { %2550 = vmatpush3.bf16.msra.mxu1 %v2904_v32 }
 0x5e5   :  { %2551 = vmatprep.subr.bf16.mxu1 %v2905_v16 }
 0x5e8   :  { %2552 = vmatpush3.bf16.msra.mxu1 %v2906_v21 }
 0x5e9   :  { %2553 = vmatprep.subr.bf16.mxu1 %v2907_v22 }
 0x5ec   :  { %2554 = vmatpush3.bf16.msra.mxu1 %v2908_v19 }
 0x5ed   :  { %2555 = vmatprep.subr.bf16.mxu1 %v2909_v23 }
 0x5f0   :  { %2556 = vmatpush3.bf16.msra.mxu1 %v2910_v24 }
 0x5f1   :  { %2557 = vmatprep.subr.bf16.mxu1 %v2911_v25 }
 0x5f4   :  { %2558 = vmatpush3.bf16.msra.mxu1 %v2912_v26 }
 0x5f5   :  { %2559 = vmatprep.subr.bf16.mxu1 %v2913_v28 }
 0x5f8   :  { %2560 = vmatpush3.bf16.msra.mxu1 %v2914_v30 }
 0x5f9   :  { %2561 = vmatprep.subr.bf16.mxu1 %v2915_v33 }
 0x5fc   :  { %2562 = vmatpush3.bf16.msra.mxu1 %v2916_v34 }
 0x5ff   :  { %2227 = vmatmul.mubr.bf16.vlgmr.msra.gmra.mrb[24].mxu1 %v1889_v36 }
 0x600   :  { %3128 = shalt.err (!%p3125_p6)
}
 0x601   :  { %s3129_s6 = scalar_lea.hbm %s3525_s16, 128 }
 0x602   :  { %p3130_p7 = scmp.ne.s32.totalorder %s3525_s16, %s3129_s6  ;;  %p3133_p8 = scmp.lt.u32.totalorder %s3129_s6, %s3525_s16 }
 0x604   :  { %p3135_p9 = pnand %p3133_p8, %p3130_p7 }
 0x606   :  { %3138 = shalt.err (!%p3135_p9)
}
 0x607   :  { %2254 = dma.vmem_to_hbm [thread:$0]  %s2252_s24, 128, %s3525_s16, [#allocation19]   ;;  %v2470_v40 = vld [vmem:[%s3523_s14] ss:$0 sm:$0xff] }
 0x608   :  { %s3192_s30 = smov [#allocation17]  }
 0x609   :  { %s2241_s8 = sshll.u32 %s3192_s30, 4  ;;  %s2242_s8 = int_to_ptr.vmem [resolvable:$true] %s2241_s8 }
 0x60a   :  { %s3139_s16 = scalar_lea.vmem %s2242_s8, 128  ;;  %p3144_p11 = scmp.lt.s32.totalorder %s2242_s8, %s2242_s8 }
 0x60b   :  { %p3140_p10 = scmp.ne.s32.totalorder %s2242_s8, %s3139_s16  ;;  %p3145_p12 = scmp.lt.s32.totalorder %s3139_s16, %s3139_s16 }
 0x60d   :  { %p3146_p13 = por %p3145_p12, %p3144_p11 }
 0x60f   :  { %p3147_p0 = pnand %p3146_p13, %p3140_p10 }
 0x6b2   :  { %v2541_v17 = vpop.f32.mrb[20].mxu1 }
 0x6b3   :  { %v2542_v5 = vpop.f32.mrb[21].mxu1 }
 0x6b4   :  { %v2543_v37 = vadd.f32 %v2542_v5, %v2541_v17  ;;  %v2544_v38 = vpop.f32.mrb[22].mxu1 }
 0x6b5   :  { %v2545_v39 = vpop.f32.mrb[23].mxu1 }
 0x6b6   :  { %v2189_v43 = vadd.f32 %v2543_v37, %v2470_v40 }
 0x6d2   :  { %v2563_v41 = vpop.f32.mrb[24].mxu1 }
 0x6d3   :  { %v2564_v42 = vpop.f32.mrb[25].mxu1 }
 0x6d4   :  { %v2565_v44 = vadd.f32 %v2564_v42, %v2563_v41  ;;  %v2566_v45 = vpop.f32.mrb[26].mxu1 }
 0x6d5   :  { %v2567_v46 = vpop.f32.mrb[27].mxu1 }
 0x6d6   :  { %v2229_v47 = vadd.f32 %v2565_v44, %v2189_v43 }
 0x6d8   :  { %2234 = vst [vmem:[#allocation17] sm:$0xff] %v2229_v47 }
 0x6d9   :  { %3150 = shalt.err (!%p3147_p0)
}
 0x6da   :  { %s3151_s1 = scalar_lea.hbm %s3524_s15, 128 }
 0x6db   :  { %p3152_p1 = scmp.ne.s32.totalorder %s3524_s15, %s3151_s1  ;;  %p3155_p2 = scmp.lt.u32.totalorder %s3151_s1, %s3524_s15 }
 0x6dd   :  { %p3157_p3 = pnand %p3155_p2, %p3152_p1 }
 0x6df   :  { %3160 = shalt.err (!%p3157_p3)
}
 0x6e0   :  { %2244 = dma.vmem_to_hbm [thread:$0]  %s2242_s8, 128, %s3524_s15, [#allocation4]  }
 0x6e1   :  { %3171 = dma.done.wait [#allocation4], 128  }
 0x6e2   :  { %3172 = vsyncadd [#allocation4], 4294967168 }
 0x6e3   :  { %3173 = dma.done.wait [#allocation19], 128  }
 0x6e4   :  { %3174 = vsyncadd [#allocation19], 4294967168 }
 0x6e5   :  { %2261 = vsyncpa [#allocation3], 1 }
 0x6e6   :  { %2262 = vsyncpa [#allocation6], 1 }
 0x6e7   :  { %2263 = vsyncpa [#allocation9], 1 }
 0x6e8   :  { %2264 = vsyncpa [#allocation12], 1 }
 0x6e9   :  { %2265 = vsyncpa [#allocation15], 1 }
 0x6ea   :  { %2266 = vsyncpa [#allocation4], 1 }
 0x6eb   :  { %2267 = vsyncpa [#allocation19], 1 }

</bundles_post_ra>
